<compile_context>
chip_gen: v7x
topology: tpu7x:2x2x1
jax: 0.10.0
libtpu: 0.0.40
codegen_flags: <defaults>
</compile_context>

<pallas_src>
import functools
import math

import jax
import jax.numpy as jnp
from jax.experimental import pallas as pl
from jax.experimental.pallas import tpu as pltpu

PAD = 0  # onmt.Constants.PAD


# ----------------------------- hardware-aware config -----------------------------

_VMEM_CAP = None


def _vmem_cap_bytes():
    """Physical VMEM per core (128 MiB on v5e/v6e, 64 MiB on v7x)."""
    global _VMEM_CAP
    if _VMEM_CAP is None:
        cap = 128 * 1024 * 1024
        try:
            info = pltpu.get_tpu_info()
            cap = int(getattr(info, "vmem_capacity_bytes", cap)) or cap
        except Exception:
            pass
        _VMEM_CAP = cap
    return _VMEM_CAP


def _vmem_limit_bytes():
    # ~85% of physical, capped: ~54 MiB on v7x, ~108 MiB on v5e/v6e.
    return min(int(_vmem_cap_bytes() * 0.85), 112 * 1024 * 1024)


def _max_row_tile():
    # v5e/v6e (128 MiB VMEM) can afford 512-row tiles; v7x keeps 256.
    return 512 if _vmem_cap_bytes() >= 96 * 1024 * 1024 else 256


def _cparams(dims):
    return pltpu.CompilerParams(dimension_semantics=dims,
                                vmem_limit_bytes=_vmem_limit_bytes())


# ----------------------------- tiling helpers -----------------------------

def _round_up(x, m):
    return (x + m - 1) // m * m


def _pick_row_tile(m, max_tile):
    """Largest divisor of round_up(m, 8) that is a multiple of 8 and <= max_tile.
    Pads further only when the best divisor would leave a large slab with tiny
    tiles (arithmetic-intensity guard)."""
    m8 = _round_up(max(m, 1), 8)
    best = 0
    for d in range(8, min(m8, max_tile) + 1, 8):
        if m8 % d == 0:
            best = d
    if best == 0:
        best = min(m8, max_tile)
    if m8 >= 4 * max_tile and best < max_tile // 2:
        best = max_tile
        m8 = _round_up(m8, best)
    return best, m8


def _pick_nk_tile(n, pref):
    """(tile, padded_n) for an N/K GEMM axis: full extent if small, `pref` if it
    divides, else the largest 128-multiple divisor <= pref, else pad to pref."""
    if n <= pref:
        return n, n
    if n % pref == 0:
        return pref, n
    for d in range(pref, 127, -128):
        if n % d == 0:
            return d, n
    return pref, _round_up(n, pref)


def _pick_q_tile(t, max_tile=256):
    if t <= max_tile:
        return t
    best = 0
    for d in range(8, max_tile + 1, 8):
        if t % d == 0:
            best = d
    return best if best else t


def _pad_rows(a, m_pad):
    m = a.shape[0]
    if m == m_pad:
        return a
    return jnp.pad(a, ((0, m_pad - m), (0, 0)))


# ----------------------------- Pallas kernels -----------------------------

def _ln_linear_kernel(x_ref, g_ref, b_ref, w_ref, bias_ref, o_ref, xn_ref, *, relu):
    """Fused LayerNorm(x) @ W + bias (optional ReLU).

    The normalized / bf16-cast row tile is cached in VMEM scratch and only
    recomputed on the first N-tile of each row tile (N is the innermost,
    non-megacore grid axis), so LN VPU/EUP work is not repeated per N tile.
    """
    @pl.when(pl.program_id(1) == 0)
    def _():
        x = x_ref[...].astype(jnp.float32)
        mean = jnp.mean(x, axis=-1, keepdims=True)
        xc = x - mean
        var = jnp.mean(xc * xc, axis=-1, keepdims=True)
        xn = (xc * jax.lax.rsqrt(var + 1e-5)) * g_ref[...] + b_ref[...]
        xn_ref[...] = xn.astype(xn_ref.dtype)

    y = jnp.dot(xn_ref[...], w_ref[...], preferred_element_type=jnp.float32)
    y = y + bias_ref[...]
    if relu:
        y = jnp.maximum(y, 0.0)
    o_ref[...] = y.astype(o_ref.dtype)


def ln_linear(x, g, b, w, bias, *, tile_m, relu=False, out_dtype=jnp.bfloat16,
              tile_n_pref=512):
    """y = LayerNorm(x) @ w + bias, row/column tiled.  K (=D) stays whole because
    the LayerNorm statistics need the full feature row."""
    M, D = x.shape
    N = w.shape[1]
    assert M % tile_m == 0
    tile_n, n_pad = _pick_nk_tile(N, tile_n_pref)
    if n_pad != N:
        w = jnp.pad(w, ((0, 0), (0, n_pad - N)))
        bias = jnp.pad(bias, (0, n_pad - N))
    grid = (M // tile_m, n_pad // tile_n)
    kern = functools.partial(_ln_linear_kernel, relu=relu)
    out = pl.pallas_call(
        kern,
        out_shape=jax.ShapeDtypeStruct((M, n_pad), out_dtype),
        grid=grid,
        in_specs=[
            pl.BlockSpec((tile_m, D), lambda i, j: (i, 0)),
            pl.BlockSpec((1, D), lambda i, j: (0, 0)),
            pl.BlockSpec((1, D), lambda i, j: (0, 0)),
            pl.BlockSpec((D, tile_n), lambda i, j: (0, j)),
            pl.BlockSpec((1, tile_n), lambda i, j: (0, j)),
        ],
        out_specs=pl.BlockSpec((tile_m, tile_n), lambda i, j: (i, j)),
        scratch_shapes=[pltpu.VMEM((tile_m, D), jnp.bfloat16)],
        compiler_params=_cparams(("parallel", "arbitrary")),
    )(x, g.reshape(1, D), b.reshape(1, D), w, bias.reshape(1, n_pad))
    return out if n_pad == N else out[:, :N]


def _linear_residual_kernel(x_ref, w_ref, bias_ref, r_ref, o_ref, acc_ref):
    """o = residual + x @ w + bias, K-tiled with an f32 VMEM accumulator (P3)."""
    @pl.when(pl.program_id(2) == 0)
    def _():
        acc_ref[...] = jnp.zeros_like(acc_ref)

    acc_ref[...] += jnp.dot(x_ref[...], w_ref[...],
                            preferred_element_type=jnp.float32)

    @pl.when(pl.program_id(2) == pl.num_programs(2) - 1)
    def _():
        o_ref[...] = (acc_ref[...] + bias_ref[...] + r_ref[...]).astype(o_ref.dtype)


def linear_residual(x, w, bias, residual, *, tile_m, tile_n_pref=512,
                    tile_k_pref=512):
    """y = residual + x @ w + bias  (residual stream stays float32)."""
    M, K = x.shape
    N = w.shape[1]
    assert M % tile_m == 0
    tile_n, n_pad = _pick_nk_tile(N, tile_n_pref)
    tile_k, k_pad = _pick_nk_tile(K, tile_k_pref)
    if k_pad != K:
        x = jnp.pad(x, ((0, 0), (0, k_pad - K)))
        w = jnp.pad(w, ((0, k_pad - K), (0, 0)))
    if n_pad != N:
        w = jnp.pad(w, ((0, 0), (0, n_pad - N)))
        bias = jnp.pad(bias, (0, n_pad - N))
        residual = jnp.pad(residual, ((0, 0), (0, n_pad - N)))
    grid = (M // tile_m, n_pad // tile_n, k_pad // tile_k)
    out = pl.pallas_call(
        _linear_residual_kernel,
        out_shape=jax.ShapeDtypeStruct((M, n_pad), jnp.float32),
        grid=grid,
        in_specs=[
            pl.BlockSpec((tile_m, tile_k), lambda i, j, k: (i, k)),
            pl.BlockSpec((tile_k, tile_n), lambda i, j, k: (k, j)),
            pl.BlockSpec((1, tile_n), lambda i, j, k: (0, j)),
            pl.BlockSpec((tile_m, tile_n), lambda i, j, k: (i, j)),
        ],
        out_specs=pl.BlockSpec((tile_m, tile_n), lambda i, j, k: (i, j)),
        scratch_shapes=[pltpu.VMEM((tile_m, tile_n), jnp.float32)],
        compiler_params=_cparams(("parallel", "parallel", "arbitrary")),
    )(x, w, bias.reshape(1, n_pad), residual)
    return out if n_pad == N else out[:, :N]


def _layernorm_kernel(x_ref, g_ref, b_ref, o_ref):
    x = x_ref[...].astype(jnp.float32)
    mean = jnp.mean(x, axis=-1, keepdims=True)
    xc = x - mean
    var = jnp.mean(xc * xc, axis=-1, keepdims=True)
    xn = xc * jax.lax.rsqrt(var + 1e-5)
    o_ref[...] = (xn * g_ref[...] + b_ref[...]).astype(o_ref.dtype)


def layernorm(x, g, b, *, tile_m):
    M, D = x.shape
    assert M % tile_m == 0
    return pl.pallas_call(
        _layernorm_kernel,
        out_shape=jax.ShapeDtypeStruct((M, D), jnp.float32),
        grid=(M // tile_m,),
        in_specs=[
            pl.BlockSpec((tile_m, D), lambda i: (i, 0)),
            pl.BlockSpec((1, D), lambda i: (0, 0)),
            pl.BlockSpec((1, D), lambda i: (0, 0)),
        ],
        out_specs=pl.BlockSpec((tile_m, D), lambda i: (i, 0)),
        compiler_params=_cparams(("parallel",)),
    )(x, g.reshape(1, D), b.reshape(1, D))


def _attention_kernel(qkv_ref, bias_ref, o_ref, *, n_heads, d_head, tq, scale):
    """Self-attention for one (batch, query-tile) grid step.

    qkv_ref : resident [1, T, 3D] bf16 block (re-DMA'd only when the batch
              index changes); heads are sliced statically off the ref so only
              [tq, dh] / [T, dh] values are live per head.
    bias_ref: additive f32 key mask [1, 1, T] (-1e9 at PAD key positions).
    o_ref   : [1, tq, D]; each head stores its result directly into its
              column slice (single lane-dense DMA per output block).
    """
    i = pl.program_id(1)
    D = n_heads * d_head
    bias = bias_ref[0]                                  # [1, T] f32
    row0 = pl.multiple_of(i * tq, tq)
    for h in range(n_heads):
        c = h * d_head
        qh = qkv_ref[0, pl.ds(row0, tq), c:c + d_head]              # [tq, dh]
        kh = qkv_ref[0, :, D + c:D + c + d_head]                    # [T,  dh]
        vh = qkv_ref[0, :, 2 * D + c:2 * D + c + d_head]            # [T,  dh]
        # q @ k^T without materializing a transpose: contract last dims.
        s = jax.lax.dot_general(qh, kh, (((1,), (1,)), ((), ())),
                                preferred_element_type=jnp.float32)
        s = s * scale + bias                                        # masked_fill
        mx = jnp.max(s, axis=-1, keepdims=True)
        p = jnp.exp(s - mx)
        denom = jnp.sum(p, axis=-1, keepdims=True)
        attn = p * pl.reciprocal(denom, approx=True)
        o_ref[0, :, c:c + d_head] = jnp.dot(
            attn.astype(vh.dtype), vh,
            preferred_element_type=jnp.float32).astype(o_ref.dtype)


def attention(qkv, attn_bias, n_heads):
    """qkv: [B, T, 3D] bf16 (fused projections), attn_bias: [B, 1, T] f32
    additive key mask (0 or -1e9)."""
    B, T, threeD = qkv.shape
    D = threeD // 3
    d_head = D // n_heads
    tq = _pick_q_tile(T)
    kern = functools.partial(_attention_kernel, n_heads=n_heads, d_head=d_head,
                             tq=tq, scale=1.0 / math.sqrt(d_head))
    return pl.pallas_call(
        kern,
        out_shape=jax.ShapeDtypeStruct((B, T, D), jnp.bfloat16),
        grid=(B, T // tq),
        in_specs=[
            pl.BlockSpec((1, T, threeD), lambda b, i: (b, 0, 0)),
            pl.BlockSpec((1, 1, T), lambda b, i: (b, 0, 0)),
        ],
        out_specs=pl.BlockSpec((1, tq, D), lambda b, i: (b, i, 0)),
        compiler_params=_cparams(("parallel", "parallel")),
    )(qkv, attn_bias)


# ------------------------------ JAX glue ------------------------------

def sinusoidal_pe(T, D):
    pos = jnp.arange(T, dtype=jnp.float32)[:, None]
    i = jnp.arange(0, D, 2, dtype=jnp.float32)
    div = jnp.exp(-math.log(10000.0) * i / D)
    pe = jnp.zeros((T, D), jnp.float32)
    pe = pe.at[:, 0::2].set(jnp.sin(pos * div))
    pe = pe.at[:, 1::2].set(jnp.cos(pos * div))
    return pe


def init_params(key, vocab, D, inner, layers):
    keys = jax.random.split(key, 1 + layers)
    emb = jax.random.normal(keys[0], (vocab, D), jnp.float32) * 0.02
    emb = emb.at[PAD].set(0.0)  # nn.Embedding(padding_idx=PAD)
    params = {
        "emb": emb,
        "ln_out_g": jnp.ones((D,), jnp.float32),
        "ln_out_b": jnp.zeros((D,), jnp.float32),
        "layers": [],
    }
    for l in range(layers):
        k = jax.random.split(keys[1 + l], 6)
        s_d = 1.0 / math.sqrt(D)
        s_i = 1.0 / math.sqrt(inner)
        wq = jax.random.normal(k[0], (D, D), jnp.float32) * s_d
        wk = jax.random.normal(k[1], (D, D), jnp.float32) * s_d
        wv = jax.random.normal(k[2], (D, D), jnp.float32) * s_d
        lp = dict(
            ln1_g=jnp.ones((D,), jnp.float32), ln1_b=jnp.zeros((D,), jnp.float32),
            # fused Q|K|V projection, bf16 weights (f32 MXU accumulation)
            wqkv=jnp.concatenate([wq, wk, wv], axis=1).astype(jnp.bfloat16),
            bqkv=jnp.zeros((3 * D,), jnp.float32),
            wo=(jax.random.normal(k[3], (D, D), jnp.float32) * s_d).astype(jnp.bfloat16),
            bo=jnp.zeros((D,), jnp.float32),
            ln2_g=jnp.ones((D,), jnp.float32), ln2_b=jnp.zeros((D,), jnp.float32),
            w1=(jax.random.normal(k[4], (D, inner), jnp.float32) * s_d).astype(jnp.bfloat16),
            b1=jnp.zeros((inner,), jnp.float32),
            w2=(jax.random.normal(k[5], (inner, D), jnp.float32) * s_i).astype(jnp.bfloat16),
            b2=jnp.zeros((D,), jnp.float32),
        )
        params["layers"].append(lp)
    return params


def transformer_encoder(tokens, params, n_heads):
    B, T = tokens.shape
    D = params["emb"].shape[1]

    # mask_src = input.eq(PAD).unsqueeze(1)  -> [B, 1, T]
    mask_src = (tokens == PAD)[:, None, :]
    # additive key mask for attention (0 where valid, -1e9 at PAD keys)
    attn_bias = mask_src.astype(jnp.float32) * jnp.float32(-1e9)

    # embedding, scale by sqrt(d_model), add positional encoding
    emb = jnp.take(params["emb"], tokens, axis=0)             # [B, T, D]
    emb = emb * math.sqrt(D) + sinusoidal_pe(T, D)[None]
    # preprocess_layer (emb dropout) -> identity in eval mode

    # Flat activation slab [B*T, D] (float32 residual stream).  Row tile is the
    # largest divisor of M (multiple of 8, capped per-chip), so the pad/unpad
    # copies below are no-ops in the common case.
    M = B * T
    tile_m, M_pad = _pick_row_tile(M, _max_row_tile())
    x = _pad_rows(emb.reshape(M, D).astype(jnp.float32), M_pad)

    def unpad(a):
        return a if M_pad == M else a[:M]

    for lp in params["layers"]:
        # --- self-attention sublayer (pre-norm, fused LN + QKV GEMM) ---
        qkv = ln_linear(x, lp["ln1_g"], lp["ln1_b"], lp["wqkv"], lp["bqkv"],
                        tile_m=tile_m)                          # [M_pad, 3D] bf16
        attn = attention(unpad(qkv).reshape(B, T, 3 * D), attn_bias, n_heads)
        attn = _pad_rows(attn.reshape(M, D), M_pad)             # [M_pad, D] bf16
        # output projection + residual add fused (dropout(0) in eval)
        x = linear_residual(attn, lp["wo"], lp["bo"], x, tile_m=tile_m)

        # --- feed-forward sublayer (pre-norm, fused LN + W1 + ReLU) ---
        h = ln_linear(x, lp["ln2_g"], lp["ln2_b"], lp["w1"], lp["b1"],
                      relu=True, tile_m=tile_m)                 # [M_pad, inner] bf16
        x = linear_residual(h, lp["w2"], lp["b2"], x, tile_m=tile_m)

    # postprocess_layer: final LayerNorm ('n')
    x = layernorm(x, params["ln_out_g"], params["ln_out_b"], tile_m=tile_m)
    context = jnp.transpose(unpad(x).reshape(B, T, D), (1, 0, 2))   # [T, B, D]
    return {"context": context, "src_mask": mask_src}


# ------------------------------ main ------------------------------

if __name__ == "__main__":
    B, T = 2, 8
    D, H, INNER, LAYERS, VOCAB = 128, 4, 256, 2, 64

    key = jax.random.PRNGKey(0)
    kp, kt = jax.random.split(key)
    params = init_params(kp, VOCAB, D, INNER, LAYERS)

    tokens = jax.random.randint(kt, (B, T), 1, VOCAB, dtype=jnp.int32)
    tokens = tokens.at[0, T - 2:].set(PAD)   # add some PAD positions

    fwd = jax.jit(transformer_encoder, static_argnums=2)
    out = fwd(tokens, params, H)
    jax.block_until_ready(out["context"])

    assert out["context"].shape == (T, B, D)
    assert out["src_mask"].shape == (B, 1, T)
    assert bool(jnp.all(jnp.isfinite(out["context"])))
    print("KERNEL_OK")
</pallas_src>

<mosaic_0001>
module attributes {stable_mosaic.version = 11 : i64} {
  func.func @_ln_linear_kernel(%arg0: i32, %arg1: i32, %arg2: memref<16x128xf32, #tpu.memory_space<vmem>>, %arg3: memref<1x128xf32, #tpu.memory_space<vmem>>, %arg4: memref<1x128xf32, #tpu.memory_space<vmem>>, %arg5: memref<128x384xbf16, #tpu.memory_space<vmem>>, %arg6: memref<1x384xf32, #tpu.memory_space<vmem>>, %arg7: memref<16x384xbf16, #tpu.memory_space<vmem>>, %arg8: memref<16x128xbf16, #tpu.memory_space<vmem>>) attributes {dimension_semantics = [#tpu.dimension_semantics<parallel>, #tpu.dimension_semantics<arbitrary>], iteration_bounds = array<i64: 1, 1>, scalar_prefetch = 0 : i64, scratch_operands = 1 : i64, tpu.core_type = #tpu.core_type<tc>, window_params = [{transform_indices = @transform_0, window_bounds = array<i64: 16, 128>}, {pipeline_mode = #tpu.pipeline_mode<synchronous>, transform_indices = @transform_1, window_bounds = array<i64: 1, 128>}, {pipeline_mode = #tpu.pipeline_mode<synchronous>, transform_indices = @transform_2, window_bounds = array<i64: 1, 128>}, {transform_indices = @transform_3, window_bounds = array<i64: 128, 384>}, {transform_indices = @transform_4, window_bounds = array<i64: 1, 384>}, {transform_indices = @transform_5, window_bounds = array<i64: 16, 384>}]} {
    %c0_i32 = arith.constant 0 : i32
    %0 = arith.cmpi eq, %arg1, %c0_i32 : i32
    %1 = arith.extui %0 : i1 to i32
    %c0_i32_0 = arith.constant 0 : i32
    %2 = arith.cmpi ne, %1, %c0_i32_0 : i32
    scf.if %2 {
      %c0_8 = arith.constant 0 : index
      %c0_9 = arith.constant 0 : index
      %11 = vector.load %arg2[%c0_8, %c0_9] : memref<16x128xf32, #tpu.memory_space<vmem>>, vector<16x128xf32>
      %cst_10 = arith.constant dense<0.000000e+00> : vector<16xf32>
      %12 = vector.multi_reduction <add>, %11, %cst_10 [1] : vector<16x128xf32> to vector<16xf32>
      %13 = vector.shape_cast %12 : vector<16xf32> to vector<16x1xf32>
      %cst_11 = arith.constant 1.280000e+02 : f32
      %14 = vector.broadcast %cst_11 : f32 to vector<16x1xf32>
      %15 = arith.divf %13, %14 : vector<16x1xf32>
      %16 = vector.broadcast %15 : vector<16x1xf32> to vector<16x128xf32>
      %17 = arith.subf %11, %16 : vector<16x128xf32>
      %18 = arith.mulf %17, %17 : vector<16x128xf32>
      %cst_12 = arith.constant dense<0.000000e+00> : vector<16xf32>
      %19 = vector.multi_reduction <add>, %18, %cst_12 [1] : vector<16x128xf32> to vector<16xf32>
      %20 = vector.shape_cast %19 : vector<16xf32> to vector<16x1xf32>
      %cst_13 = arith.constant 1.280000e+02 : f32
      %21 = vector.broadcast %cst_13 : f32 to vector<16x1xf32>
      %22 = arith.divf %20, %21 : vector<16x1xf32>
      %cst_14 = arith.constant 9.99999974E-6 : f32
      %23 = vector.broadcast %cst_14 : f32 to vector<16x1xf32>
      %24 = arith.addf %22, %23 : vector<16x1xf32>
      %25 = math.rsqrt %24 : vector<16x1xf32>
      %26 = vector.broadcast %25 : vector<16x1xf32> to vector<16x128xf32>
      %27 = arith.mulf %17, %26 : vector<16x128xf32>
      %c0_15 = arith.constant 0 : index
      %c0_16 = arith.constant 0 : index
      %28 = vector.load %arg3[%c0_15, %c0_16] : memref<1x128xf32, #tpu.memory_space<vmem>>, vector<1x128xf32>
      %29 = vector.broadcast %28 : vector<1x128xf32> to vector<16x128xf32>
      %30 = arith.mulf %27, %29 : vector<16x128xf32>
      %c0_17 = arith.constant 0 : index
      %c0_18 = arith.constant 0 : index
      %31 = vector.load %arg4[%c0_17, %c0_18] : memref<1x128xf32, #tpu.memory_space<vmem>>, vector<1x128xf32>
      %32 = vector.broadcast %31 : vector<1x128xf32> to vector<16x128xf32>
      %33 = arith.addf %30, %32 : vector<16x128xf32>
      %34 = arith.truncf %33 : vector<16x128xf32> to vector<16x128xbf16>
      %c0_19 = arith.constant 0 : index
      %c0_20 = arith.constant 0 : index
      %35 = vector.load %arg8[%c0_19, %c0_20] : memref<16x128xbf16, #tpu.memory_space<vmem>>, vector<16x128xbf16>
      tpu.vector_store %arg8[%c0_19, %c0_20], %34 {strides = array<i32>} : memref<16x128xbf16, #tpu.memory_space<vmem>>, vector<16x128xbf16>,
    } else {
    }
    %c0 = arith.constant 0 : index
    %c0_1 = arith.constant 0 : index
    %3 = vector.load %arg8[%c0, %c0_1] : memref<16x128xbf16, #tpu.memory_space<vmem>>, vector<16x128xbf16>
    %c0_2 = arith.constant 0 : index
    %c0_3 = arith.constant 0 : index
    %4 = vector.load %arg5[%c0_2, %c0_3] : memref<128x384xbf16, #tpu.memory_space<vmem>>, vector<128x384xbf16>
    %cst = arith.constant dense<0.000000e+00> : vector<16x384xf32>
    %5 = tpu.matmul %3, %4, %cst {dimension_numbers = #tpu.dot_dimension_numbers<[1], [0], [0], [1], [0, 0, 1, 1], [], []>} : vector<16x128xbf16>, vector<128x384xbf16>, vector<16x384xf32> -> vector<16x384xf32>
    %c0_4 = arith.constant 0 : index
    %c0_5 = arith.constant 0 : index
    %6 = vector.load %arg6[%c0_4, %c0_5] : memref<1x384xf32, #tpu.memory_space<vmem>>, vector<1x384xf32>
    %7 = vector.broadcast %6 : vector<1x384xf32> to vector<16x384xf32>
    %8 = arith.addf %5, %7 : vector<16x384xf32>
    %9 = arith.truncf %8 : vector<16x384xf32> to vector<16x384xbf16>
    %c0_6 = arith.constant 0 : index
    %c0_7 = arith.constant 0 : index
    %10 = vector.load %arg7[%c0_6, %c0_7] : memref<16x384xbf16, #tpu.memory_space<vmem>>, vector<16x384xbf16>
    tpu.vector_store %arg7[%c0_6, %c0_7], %9 {strides = array<i32>} : memref<16x384xbf16, #tpu.memory_space<vmem>>, vector<16x384xbf16>,
    return
  }
  func.func @transform_0(%arg0: i32, %arg1: i32) -> (i32, i32) {
    %c0_i32 = arith.constant 0 : i32
    %c0_i32_0 = arith.constant 0 : i32
    return %arg0, %c0_i32 : i32, i32
  }
  func.func @transform_1(%arg0: i32, %arg1: i32) -> (i32, i32) {
    %c0_i32 = arith.constant 0 : i32
    %c0_i32_0 = arith.constant 0 : i32
    %c0_i32_1 = arith.constant 0 : i32
    return %c0_i32, %c0_i32_0 : i32, i32
  }
  func.func @transform_2(%arg0: i32, %arg1: i32) -> (i32, i32) {
    %c0_i32 = arith.constant 0 : i32
    %c0_i32_0 = arith.constant 0 : i32
    %c0_i32_1 = arith.constant 0 : i32
    return %c0_i32, %c0_i32_0 : i32, i32
  }
  func.func @transform_3(%arg0: i32, %arg1: i32) -> (i32, i32) {
    %c0_i32 = arith.constant 0 : i32
    %c0_i32_0 = arith.constant 0 : i32
    return %c0_i32, %arg1 : i32, i32
  }
  func.func @transform_4(%arg0: i32, %arg1: i32) -> (i32, i32) {
    %c0_i32 = arith.constant 0 : i32
    %c0_i32_0 = arith.constant 0 : i32
    return %c0_i32, %arg1 : i32, i32
  }
  func.func @transform_5(%arg0: i32, %arg1: i32) -> (i32, i32) {
    %c0_i32 = arith.constant 0 : i32
    return %arg0, %arg1 : i32, i32
  }
}

module attributes {stable_mosaic.version = 11 : i64} {
  func.func @_attention_kernel(%arg0: i32, %arg1: i32, %arg2: memref<1x8x384xbf16, #tpu.memory_space<vmem>>, %arg3: memref<1x1x8xf32, #tpu.memory_space<vmem>>, %arg4: memref<1x8x128xbf16, #tpu.memory_space<vmem>>) attributes {dimension_semantics = [#tpu.dimension_semantics<parallel>, #tpu.dimension_semantics<parallel>], iteration_bounds = array<i64: 2, 1>, scalar_prefetch = 0 : i64, scratch_operands = 0 : i64, tpu.core_type = #tpu.core_type<tc>, window_params = [{transform_indices = @transform_0, window_bounds = array<i64: 1, 8, 384>}, {transform_indices = @transform_1, window_bounds = array<i64: 1, 1, 8>}, {transform_indices = @transform_2, window_bounds = array<i64: 1, 8, 128>}]} {
    %c0 = arith.constant 0 : index
    %c0_0 = arith.constant 0 : index
    %c0_1 = arith.constant 0 : index
    %0 = vector.load %arg3[%c0, %c0_0, %c0_1] : memref<1x1x8xf32, #tpu.memory_space<vmem>>, vector<1x1x8xf32>
    %1 = vector.shape_cast %0 : vector<1x1x8xf32> to vector<1x8xf32>
    %c8_i32 = arith.constant 8 : i32
    %2 = arith.muli %arg1, %c8_i32 : i32
    %3 = tpu.assume_multiple %2, 8 : i32
    %c0_2 = arith.constant 0 : index
    %4 = arith.index_cast %3 : i32 to index
    %c0_3 = arith.constant 0 : index
    %5 = vector.load %arg2[%c0_2, %4, %c0_3] : memref<1x8x384xbf16, #tpu.memory_space<vmem>>, vector<1x8x32xbf16>
    %6 = vector.shape_cast %5 : vector<1x8x32xbf16> to vector<8x32xbf16>
    %c0_4 = arith.constant 0 : index
    %c0_5 = arith.constant 0 : index
    %c128 = arith.constant 128 : index
    %7 = vector.load %arg2[%c0_4, %c0_5, %c128] : memref<1x8x384xbf16, #tpu.memory_space<vmem>>, vector<1x8x32xbf16>
    %8 = vector.shape_cast %7 : vector<1x8x32xbf16> to vector<8x32xbf16>
    %c0_6 = arith.constant 0 : index
    %c0_7 = arith.constant 0 : index
    %c256 = arith.constant 256 : index
    %9 = vector.load %arg2[%c0_6, %c0_7, %c256] : memref<1x8x384xbf16, #tpu.memory_space<vmem>>, vector<1x8x32xbf16>
    %10 = vector.shape_cast %9 : vector<1x8x32xbf16> to vector<8x32xbf16>
    %cst = arith.constant dense<0.000000e+00> : vector<8x8xf32>
    %11 = tpu.matmul %6, %8, %cst {dimension_numbers = #tpu.dot_dimension_numbers<[1], [1], [0], [0], [0, 0, 1, 0], [], []>} : vector<8x32xbf16>, vector<8x32xbf16>, vector<8x8xf32> -> vector<8x8xf32>
    %cst_8 = arith.constant 0.176776692 : f32
    %12 = vector.broadcast %cst_8 : f32 to vector<8x8xf32>
    %13 = arith.mulf %11, %12 : vector<8x8xf32>
    %14 = vector.broadcast %1 : vector<1x8xf32> to vector<8x8xf32>
    %15 = arith.addf %13, %14 : vector<8x8xf32>
    %cst_9 = arith.constant dense<0xFF800000> : vector<8xf32>
    %16 = vector.multi_reduction <maximumf>, %15, %cst_9 [1] : vector<8x8xf32> to vector<8xf32>
    %17 = vector.shape_cast %16 : vector<8xf32> to vector<8x1xf32>
    %18 = vector.broadcast %17 : vector<8x1xf32> to vector<8x8xf32>
    %19 = arith.subf %15, %18 : vector<8x8xf32>
    %20 = math.exp %19 : vector<8x8xf32>
    %cst_10 = arith.constant dense<0.000000e+00> : vector<8xf32>
    %21 = vector.multi_reduction <add>, %20, %cst_10 [1] : vector<8x8xf32> to vector<8xf32>
    %22 = vector.shape_cast %21 : vector<8xf32> to vector<8x1xf32>
    %23 = tpu.reciprocal %22 {approx = true} : vector<8x1xf32> -> vector<8x1xf32>
    %24 = vector.broadcast %23 : vector<8x1xf32> to vector<8x8xf32>
    %25 = arith.mulf %20, %24 : vector<8x8xf32>
    %26 = arith.truncf %25 : vector<8x8xf32> to vector<8x8xbf16>
    %cst_11 = arith.constant dense<0.000000e+00> : vector<8x32xf32>
    %27 = tpu.matmul %26, %10, %cst_11 {dimension_numbers = #tpu.dot_dimension_numbers<[1], [0], [0], [1], [0, 0, 1, 1], [], []>} : vector<8x8xbf16>, vector<8x32xbf16>, vector<8x32xf32> -> vector<8x32xf32>
    %28 = arith.truncf %27 : vector<8x32xf32> to vector<8x32xbf16>
    %c0_12 = arith.constant 0 : index
    %c0_13 = arith.constant 0 : index
    %c0_14 = arith.constant 0 : index
    %29 = vector.load %arg4[%c0_12, %c0_13, %c0_14] : memref<1x8x128xbf16, #tpu.memory_space<vmem>>, vector<1x8x32xbf16>
    %30 = vector.shape_cast %29 : vector<1x8x32xbf16> to vector<8x32xbf16>
    %31 = vector.shape_cast %28 : vector<8x32xbf16> to vector<1x8x32xbf16>
    tpu.vector_store %arg4[%c0_12, %c0_13, %c0_14], %31 {strides = array<i32>} : memref<1x8x128xbf16, #tpu.memory_space<vmem>>, vector<1x8x32xbf16>,
    %c0_15 = arith.constant 0 : index
    %32 = arith.index_cast %3 : i32 to index
    %c32 = arith.constant 32 : index
    %33 = vector.load %arg2[%c0_15, %32, %c32] : memref<1x8x384xbf16, #tpu.memory_space<vmem>>, vector<1x8x32xbf16>
    %34 = vector.shape_cast %33 : vector<1x8x32xbf16> to vector<8x32xbf16>
    %c0_16 = arith.constant 0 : index
    %c0_17 = arith.constant 0 : index
    %c160 = arith.constant 160 : index
    %35 = vector.load %arg2[%c0_16, %c0_17, %c160] : memref<1x8x384xbf16, #tpu.memory_space<vmem>>, vector<1x8x32xbf16>
    %36 = vector.shape_cast %35 : vector<1x8x32xbf16> to vector<8x32xbf16>
    %c0_18 = arith.constant 0 : index
    %c0_19 = arith.constant 0 : index
    %c288 = arith.constant 288 : index
    %37 = vector.load %arg2[%c0_18, %c0_19, %c288] : memref<1x8x384xbf16, #tpu.memory_space<vmem>>, vector<1x8x32xbf16>
    %38 = vector.shape_cast %37 : vector<1x8x32xbf16> to vector<8x32xbf16>
    %cst_20 = arith.constant dense<0.000000e+00> : vector<8x8xf32>
    %39 = tpu.matmul %34, %36, %cst_20 {dimension_numbers = #tpu.dot_dimension_numbers<[1], [1], [0], [0], [0, 0, 1, 0], [], []>} : vector<8x32xbf16>, vector<8x32xbf16>, vector<8x8xf32> -> vector<8x8xf32>
    %cst_21 = arith.constant 0.176776692 : f32
    %40 = vector.broadcast %cst_21 : f32 to vector<8x8xf32>
    %41 = arith.mulf %39, %40 : vector<8x8xf32>
    %42 = vector.broadcast %1 : vector<1x8xf32> to vector<8x8xf32>
    %43 = arith.addf %41, %42 : vector<8x8xf32>
    %cst_22 = arith.constant dense<0xFF800000> : vector<8xf32>
    %44 = vector.multi_reduction <maximumf>, %43, %cst_22 [1] : vector<8x8xf32> to vector<8xf32>
    %45 = vector.shape_cast %44 : vector<8xf32> to vector<8x1xf32>
    %46 = vector.broadcast %45 : vector<8x1xf32> to vector<8x8xf32>
    %47 = arith.subf %43, %46 : vector<8x8xf32>
    %48 = math.exp %47 : vector<8x8xf32>
    %cst_23 = arith.constant dense<0.000000e+00> : vector<8xf32>
    %49 = vector.multi_reduction <add>, %48, %cst_23 [1] : vector<8x8xf32> to vector<8xf32>
    %50 = vector.shape_cast %49 : vector<8xf32> to vector<8x1xf32>
    %51 = tpu.reciprocal %50 {approx = true} : vector<8x1xf32> -> vector<8x1xf32>
    %52 = vector.broadcast %51 : vector<8x1xf32> to vector<8x8xf32>
    %53 = arith.mulf %48, %52 : vector<8x8xf32>
    %54 = arith.truncf %53 : vector<8x8xf32> to vector<8x8xbf16>
    %cst_24 = arith.constant dense<0.000000e+00> : vector<8x32xf32>
    %55 = tpu.matmul %54, %38, %cst_24 {dimension_numbers = #tpu.dot_dimension_numbers<[1], [0], [0], [1], [0, 0, 1, 1], [], []>} : vector<8x8xbf16>, vector<8x32xbf16>, vector<8x32xf32> -> vector<8x32xf32>
    %56 = arith.truncf %55 : vector<8x32xf32> to vector<8x32xbf16>
    %c0_25 = arith.constant 0 : index
    %c0_26 = arith.constant 0 : index
    %c32_27 = arith.constant 32 : index
    %57 = vector.load %arg4[%c0_25, %c0_26, %c32_27] : memref<1x8x128xbf16, #tpu.memory_space<vmem>>, vector<1x8x32xbf16>
    %58 = vector.shape_cast %57 : vector<1x8x32xbf16> to vector<8x32xbf16>
    %59 = vector.shape_cast %56 : vector<8x32xbf16> to vector<1x8x32xbf16>
    tpu.vector_store %arg4[%c0_25, %c0_26, %c32_27], %59 {strides = array<i32>} : memref<1x8x128xbf16, #tpu.memory_space<vmem>>, vector<1x8x32xbf16>,
    %c0_28 = arith.constant 0 : index
    %60 = arith.index_cast %3 : i32 to index
    %c64 = arith.constant 64 : index
    %61 = vector.load %arg2[%c0_28, %60, %c64] : memref<1x8x384xbf16, #tpu.memory_space<vmem>>, vector<1x8x32xbf16>
    %62 = vector.shape_cast %61 : vector<1x8x32xbf16> to vector<8x32xbf16>
    %c0_29 = arith.constant 0 : index
    %c0_30 = arith.constant 0 : index
    %c192 = arith.constant 192 : index
    %63 = vector.load %arg2[%c0_29, %c0_30, %c192] : memref<1x8x384xbf16, #tpu.memory_space<vmem>>, vector<1x8x32xbf16>
    %64 = vector.shape_cast %63 : vector<1x8x32xbf16> to vector<8x32xbf16>
    %c0_31 = arith.constant 0 : index
    %c0_32 = arith.constant 0 : index
    %c320 = arith.constant 320 : index
    %65 = vector.load %arg2[%c0_31, %c0_32, %c320] : memref<1x8x384xbf16, #tpu.memory_space<vmem>>, vector<1x8x32xbf16>
    %66 = vector.shape_cast %65 : vector<1x8x32xbf16> to vector<8x32xbf16>
    %cst_33 = arith.constant dense<0.000000e+00> : vector<8x8xf32>
    %67 = tpu.matmul %62, %64, %cst_33 {dimension_numbers = #tpu.dot_dimension_numbers<[1], [1], [0], [0], [0, 0, 1, 0], [], []>} : vector<8x32xbf16>, vector<8x32xbf16>, vector<8x8xf32> -> vector<8x8xf32>
    %cst_34 = arith.constant 0.176776692 : f32
    %68 = vector.broadcast %cst_34 : f32 to vector<8x8xf32>
    %69 = arith.mulf %67, %68 : vector<8x8xf32>
    %70 = vector.broadcast %1 : vector<1x8xf32> to vector<8x8xf32>
    %71 = arith.addf %69, %70 : vector<8x8xf32>
    %cst_35 = arith.constant dense<0xFF800000> : vector<8xf32>
    %72 = vector.multi_reduction <maximumf>, %71, %cst_35 [1] : vector<8x8xf32> to vector<8xf32>
    %73 = vector.shape_cast %72 : vector<8xf32> to vector<8x1xf32>
    %74 = vector.broadcast %73 : vector<8x1xf32> to vector<8x8xf32>
    %75 = arith.subf %71, %74 : vector<8x8xf32>
    %76 = math.exp %75 : vector<8x8xf32>
    %cst_36 = arith.constant dense<0.000000e+00> : vector<8xf32>
    %77 = vector.multi_reduction <add>, %76, %cst_36 [1] : vector<8x8xf32> to vector<8xf32>
    %78 = vector.shape_cast %77 : vector<8xf32> to vector<8x1xf32>
    %79 = tpu.reciprocal %78 {approx = true} : vector<8x1xf32> -> vector<8x1xf32>
    %80 = vector.broadcast %79 : vector<8x1xf32> to vector<8x8xf32>
    %81 = arith.mulf %76, %80 : vector<8x8xf32>
    %82 = arith.truncf %81 : vector<8x8xf32> to vector<8x8xbf16>
    %cst_37 = arith.constant dense<0.000000e+00> : vector<8x32xf32>
    %83 = tpu.matmul %82, %66, %cst_37 {dimension_numbers = #tpu.dot_dimension_numbers<[1], [0], [0], [1], [0, 0, 1, 1], [], []>} : vector<8x8xbf16>, vector<8x32xbf16>, vector<8x32xf32> -> vector<8x32xf32>
    %84 = arith.truncf %83 : vector<8x32xf32> to vector<8x32xbf16>
    %c0_38 = arith.constant 0 : index
    %c0_39 = arith.constant 0 : index
    %c64_40 = arith.constant 64 : index
    %85 = vector.load %arg4[%c0_38, %c0_39, %c64_40] : memref<1x8x128xbf16, #tpu.memory_space<vmem>>, vector<1x8x32xbf16>
    %86 = vector.shape_cast %85 : vector<1x8x32xbf16> to vector<8x32xbf16>
    %87 = vector.shape_cast %84 : vector<8x32xbf16> to vector<1x8x32xbf16>
    tpu.vector_store %arg4[%c0_38, %c0_39, %c64_40], %87 {strides = array<i32>} : memref<1x8x128xbf16, #tpu.memory_space<vmem>>, vector<1x8x32xbf16>,
    %c0_41 = arith.constant 0 : index
    %88 = arith.index_cast %3 : i32 to index
    %c96 = arith.constant 96 : index
    %89 = vector.load %arg2[%c0_41, %88, %c96] : memref<1x8x384xbf16, #tpu.memory_space<vmem>>, vector<1x8x32xbf16>
    %90 = vector.shape_cast %89 : vector<1x8x32xbf16> to vector<8x32xbf16>
    %c0_42 = arith.constant 0 : index
    %c0_43 = arith.constant 0 : index
    %c224 = arith.constant 224 : index
    %91 = vector.load %arg2[%c0_42, %c0_43, %c224] : memref<1x8x384xbf16, #tpu.memory_space<vmem>>, vector<1x8x32xbf16>
    %92 = vector.shape_cast %91 : vector<1x8x32xbf16> to vector<8x32xbf16>
    %c0_44 = arith.constant 0 : index
    %c0_45 = arith.constant 0 : index
    %c352 = arith.constant 352 : index
    %93 = vector.load %arg2[%c0_44, %c0_45, %c352] : memref<1x8x384xbf16, #tpu.memory_space<vmem>>, vector<1x8x32xbf16>
    %94 = vector.shape_cast %93 : vector<1x8x32xbf16> to vector<8x32xbf16>
    %cst_46 = arith.constant dense<0.000000e+00> : vector<8x8xf32>
    %95 = tpu.matmul %90, %92, %cst_46 {dimension_numbers = #tpu.dot_dimension_numbers<[1], [1], [0], [0], [0, 0, 1, 0], [], []>} : vector<8x32xbf16>, vector<8x32xbf16>, vector<8x8xf32> -> vector<8x8xf32>
    %cst_47 = arith.constant 0.176776692 : f32
    %96 = vector.broadcast %cst_47 : f32 to vector<8x8xf32>
    %97 = arith.mulf %95, %96 : vector<8x8xf32>
    %98 = vector.broadcast %1 : vector<1x8xf32> to vector<8x8xf32>
    %99 = arith.addf %97, %98 : vector<8x8xf32>
    %cst_48 = arith.constant dense<0xFF800000> : vector<8xf32>
    %100 = vector.multi_reduction <maximumf>, %99, %cst_48 [1] : vector<8x8xf32> to vector<8xf32>
    %101 = vector.shape_cast %100 : vector<8xf32> to vector<8x1xf32>
    %102 = vector.broadcast %101 : vector<8x1xf32> to vector<8x8xf32>
    %103 = arith.subf %99, %102 : vector<8x8xf32>
    %104 = math.exp %103 : vector<8x8xf32>
    %cst_49 = arith.constant dense<0.000000e+00> : vector<8xf32>
    %105 = vector.multi_reduction <add>, %104, %cst_49 [1] : vector<8x8xf32> to vector<8xf32>
    %106 = vector.shape_cast %105 : vector<8xf32> to vector<8x1xf32>
    %107 = tpu.reciprocal %106 {approx = true} : vector<8x1xf32> -> vector<8x1xf32>
    %108 = vector.broadcast %107 : vector<8x1xf32> to vector<8x8xf32>
    %109 = arith.mulf %104, %108 : vector<8x8xf32>
    %110 = arith.truncf %109 : vector<8x8xf32> to vector<8x8xbf16>
    %cst_50 = arith.constant dense<0.000000e+00> : vector<8x32xf32>
    %111 = tpu.matmul %110, %94, %cst_50 {dimension_numbers = #tpu.dot_dimension_numbers<[1], [0], [0], [1], [0, 0, 1, 1], [], []>} : vector<8x8xbf16>, vector<8x32xbf16>, vector<8x32xf32> -> vector<8x32xf32>
    %112 = arith.truncf %111 : vector<8x32xf32> to vector<8x32xbf16>
    %c0_51 = arith.constant 0 : index
    %c0_52 = arith.constant 0 : index
    %c96_53 = arith.constant 96 : index
    %113 = vector.load %arg4[%c0_51, %c0_52, %c96_53] : memref<1x8x128xbf16, #tpu.memory_space<vmem>>, vector<1x8x32xbf16>
    %114 = vector.shape_cast %113 : vector<1x8x32xbf16> to vector<8x32xbf16>
    %115 = vector.shape_cast %112 : vector<8x32xbf16> to vector<1x8x32xbf16>
    tpu.vector_store %arg4[%c0_51, %c0_52, %c96_53], %115 {strides = array<i32>} : memref<1x8x128xbf16, #tpu.memory_space<vmem>>, vector<1x8x32xbf16>,
    return
  }
  func.func @transform_0(%arg0: i32, %arg1: i32) -> (i32, i32, i32) {
    %c0_i32 = arith.constant 0 : i32
    %c0_i32_0 = arith.constant 0 : i32
    %c0_i32_1 = arith.constant 0 : i32
    return %arg0, %c0_i32, %c0_i32_0 : i32, i32, i32
  }
  func.func @transform_1(%arg0: i32, %arg1: i32) -> (i32, i32, i32) {
    %c0_i32 = arith.constant 0 : i32
    %c0_i32_0 = arith.constant 0 : i32
    %c0_i32_1 = arith.constant 0 : i32
    return %arg0, %c0_i32, %c0_i32_0 : i32, i32, i32
  }
  func.func @transform_2(%arg0: i32, %arg1: i32) -> (i32, i32, i32) {
    %c0_i32 = arith.constant 0 : i32
    %c0_i32_0 = arith.constant 0 : i32
    return %arg0, %arg1, %c0_i32 : i32, i32, i32
  }
}

module attributes {stable_mosaic.version = 11 : i64} {
  func.func @_linear_residual_kernel(%arg0: i32, %arg1: i32, %arg2: i32, %arg3: memref<16x128xbf16, #tpu.memory_space<vmem>>, %arg4: memref<128x128xbf16, #tpu.memory_space<vmem>>, %arg5: memref<1x128xf32, #tpu.memory_space<vmem>>, %arg6: memref<16x128xf32, #tpu.memory_space<vmem>>, %arg7: memref<16x128xf32, #tpu.memory_space<vmem>>, %arg8: memref<16x128xf32, #tpu.memory_space<vmem>>) attributes {dimension_semantics = [#tpu.dimension_semantics<parallel>, #tpu.dimension_semantics<parallel>, #tpu.dimension_semantics<arbitrary>], iteration_bounds = array<i64: 1, 1, 1>, scalar_prefetch = 0 : i64, scratch_operands = 1 : i64, tpu.core_type = #tpu.core_type<tc>, window_params = [{transform_indices = @transform_0, window_bounds = array<i64: 16, 128>}, {transform_indices = @transform_1, window_bounds = array<i64: 128, 128>}, {transform_indices = @transform_2, window_bounds = array<i64: 1, 128>}, {transform_indices = @transform_3, window_bounds = array<i64: 16, 128>}, {transform_indices = @transform_4, window_bounds = array<i64: 16, 128>}]} {
    %c0_i32 = arith.constant 0 : i32
    %0 = arith.cmpi eq, %arg2, %c0_i32 : i32
    %1 = arith.extui %0 : i1 to i32
    %c0_i32_0 = arith.constant 0 : i32
    %2 = arith.cmpi ne, %1, %c0_i32_0 : i32
    scf.if %2 {
      %cst_10 = arith.constant 0.000000e+00 : f32
      %12 = vector.broadcast %cst_10 : f32 to vector<16x128xf32>
      %c0_11 = arith.constant 0 : index
      %c0_12 = arith.constant 0 : index
      %13 = vector.load %arg8[%c0_11, %c0_12] : memref<16x128xf32, #tpu.memory_space<vmem>>, vector<16x128xf32>
      tpu.vector_store %arg8[%c0_11, %c0_12], %12 {strides = array<i32>} : memref<16x128xf32, #tpu.memory_space<vmem>>, vector<16x128xf32>,
    } else {
    }
    %c0 = arith.constant 0 : index
    %c0_1 = arith.constant 0 : index
    %3 = vector.load %arg8[%c0, %c0_1] : memref<16x128xf32, #tpu.memory_space<vmem>>, vector<16x128xf32>
    %c0_2 = arith.constant 0 : index
    %c0_3 = arith.constant 0 : index
    %4 = vector.load %arg3[%c0_2, %c0_3] : memref<16x128xbf16, #tpu.memory_space<vmem>>, vector<16x128xbf16>
    %c0_4 = arith.constant 0 : index
    %c0_5 = arith.constant 0 : index
    %5 = vector.load %arg4[%c0_4, %c0_5] : memref<128x128xbf16, #tpu.memory_space<vmem>>, vector<128x128xbf16>
    %cst = arith.constant dense<0.000000e+00> : vector<16x128xf32>
    %6 = tpu.matmul %4, %5, %cst {dimension_numbers = #tpu.dot_dimension_numbers<[1], [0], [0], [1], [0, 0, 1, 1], [], []>} : vector<16x128xbf16>, vector<128x128xbf16>, vector<16x128xf32> -> vector<16x128xf32>
    %7 = arith.addf %3, %6 : vector<16x128xf32>
    %c0_6 = arith.constant 0 : index
    %c0_7 = arith.constant 0 : index
    %8 = vector.load %arg8[%c0_6, %c0_7] : memref<16x128xf32, #tpu.memory_space<vmem>>, vector<16x128xf32>
    tpu.vector_store %arg8[%c0_6, %c0_7], %7 {strides = array<i32>} : memref<16x128xf32, #tpu.memory_space<vmem>>, vector<16x128xf32>,
    %c0_i32_8 = arith.constant 0 : i32
    %9 = arith.cmpi eq, %arg2, %c0_i32_8 : i32
    %10 = arith.extui %9 : i1 to i32
    %c0_i32_9 = arith.constant 0 : i32
    %11 = arith.cmpi ne, %10, %c0_i32_9 : i32
    scf.if %11 {
      %c0_10 = arith.constant 0 : index
      %c0_11 = arith.constant 0 : index
      %12 = vector.load %arg8[%c0_10, %c0_11] : memref<16x128xf32, #tpu.memory_space<vmem>>, vector<16x128xf32>
      %c0_12 = arith.constant 0 : index
      %c0_13 = arith.constant 0 : index
      %13 = vector.load %arg5[%c0_12, %c0_13] : memref<1x128xf32, #tpu.memory_space<vmem>>, vector<1x128xf32>
      %14 = vector.broadcast %13 : vector<1x128xf32> to vector<16x128xf32>
      %15 = arith.addf %12, %14 : vector<16x128xf32>
      %c0_14 = arith.constant 0 : index
      %c0_15 = arith.constant 0 : index
      %16 = vector.load %arg6[%c0_14, %c0_15] : memref<16x128xf32, #tpu.memory_space<vmem>>, vector<16x128xf32>
      %17 = arith.addf %15, %16 : vector<16x128xf32>
      %c0_16 = arith.constant 0 : index
      %c0_17 = arith.constant 0 : index
      %18 = vector.load %arg7[%c0_16, %c0_17] : memref<16x128xf32, #tpu.memory_space<vmem>>, vector<16x128xf32>
      tpu.vector_store %arg7[%c0_16, %c0_17], %17 {strides = array<i32>} : memref<16x128xf32, #tpu.memory_space<vmem>>, vector<16x128xf32>,
    } else {
    }
    return
  }
  func.func @transform_0(%arg0: i32, %arg1: i32, %arg2: i32) -> (i32, i32) {
    %c0_i32 = arith.constant 0 : i32
    return %arg0, %arg2 : i32, i32
  }
  func.func @transform_1(%arg0: i32, %arg1: i32, %arg2: i32) -> (i32, i32) {
    %c0_i32 = arith.constant 0 : i32
    return %arg2, %arg1 : i32, i32
  }
  func.func @transform_2(%arg0: i32, %arg1: i32, %arg2: i32) -> (i32, i32) {
    %c0_i32 = arith.constant 0 : i32
    %c0_i32_0 = arith.constant 0 : i32
    return %c0_i32, %arg1 : i32, i32
  }
  func.func @transform_3(%arg0: i32, %arg1: i32, %arg2: i32) -> (i32, i32) {
    %c0_i32 = arith.constant 0 : i32
    return %arg0, %arg1 : i32, i32
  }
  func.func @transform_4(%arg0: i32, %arg1: i32, %arg2: i32) -> (i32, i32) {
    %c0_i32 = arith.constant 0 : i32
    return %arg0, %arg1 : i32, i32
  }
}

module attributes {stable_mosaic.version = 11 : i64} {
  func.func @_ln_linear_kernel(%arg0: i32, %arg1: i32, %arg2: memref<16x128xf32, #tpu.memory_space<vmem>>, %arg3: memref<1x128xf32, #tpu.memory_space<vmem>>, %arg4: memref<1x128xf32, #tpu.memory_space<vmem>>, %arg5: memref<128x256xbf16, #tpu.memory_space<vmem>>, %arg6: memref<1x256xf32, #tpu.memory_space<vmem>>, %arg7: memref<16x256xbf16, #tpu.memory_space<vmem>>, %arg8: memref<16x128xbf16, #tpu.memory_space<vmem>>) attributes {dimension_semantics = [#tpu.dimension_semantics<parallel>, #tpu.dimension_semantics<arbitrary>], iteration_bounds = array<i64: 1, 1>, scalar_prefetch = 0 : i64, scratch_operands = 1 : i64, tpu.core_type = #tpu.core_type<tc>, window_params = [{transform_indices = @transform_0, window_bounds = array<i64: 16, 128>}, {pipeline_mode = #tpu.pipeline_mode<synchronous>, transform_indices = @transform_1, window_bounds = array<i64: 1, 128>}, {pipeline_mode = #tpu.pipeline_mode<synchronous>, transform_indices = @transform_2, window_bounds = array<i64: 1, 128>}, {transform_indices = @transform_3, window_bounds = array<i64: 128, 256>}, {transform_indices = @transform_4, window_bounds = array<i64: 1, 256>}, {transform_indices = @transform_5, window_bounds = array<i64: 16, 256>}]} {
    %c0_i32 = arith.constant 0 : i32
    %0 = arith.cmpi eq, %arg1, %c0_i32 : i32
    %1 = arith.extui %0 : i1 to i32
    %c0_i32_0 = arith.constant 0 : i32
    %2 = arith.cmpi ne, %1, %c0_i32_0 : i32
    scf.if %2 {
      %c0_9 = arith.constant 0 : index
      %c0_10 = arith.constant 0 : index
      %13 = vector.load %arg2[%c0_9, %c0_10] : memref<16x128xf32, #tpu.memory_space<vmem>>, vector<16x128xf32>
      %cst_11 = arith.constant dense<0.000000e+00> : vector<16xf32>
      %14 = vector.multi_reduction <add>, %13, %cst_11 [1] : vector<16x128xf32> to vector<16xf32>
      %15 = vector.shape_cast %14 : vector<16xf32> to vector<16x1xf32>
      %cst_12 = arith.constant 1.280000e+02 : f32
      %16 = vector.broadcast %cst_12 : f32 to vector<16x1xf32>
      %17 = arith.divf %15, %16 : vector<16x1xf32>
      %18 = vector.broadcast %17 : vector<16x1xf32> to vector<16x128xf32>
      %19 = arith.subf %13, %18 : vector<16x128xf32>
      %20 = arith.mulf %19, %19 : vector<16x128xf32>
      %cst_13 = arith.constant dense<0.000000e+00> : vector<16xf32>
      %21 = vector.multi_reduction <add>, %20, %cst_13 [1] : vector<16x128xf32> to vector<16xf32>
      %22 = vector.shape_cast %21 : vector<16xf32> to vector<16x1xf32>
      %cst_14 = arith.constant 1.280000e+02 : f32
      %23 = vector.broadcast %cst_14 : f32 to vector<16x1xf32>
      %24 = arith.divf %22, %23 : vector<16x1xf32>
      %cst_15 = arith.constant 9.99999974E-6 : f32
      %25 = vector.broadcast %cst_15 : f32 to vector<16x1xf32>
      %26 = arith.addf %24, %25 : vector<16x1xf32>
      %27 = math.rsqrt %26 : vector<16x1xf32>
      %28 = vector.broadcast %27 : vector<16x1xf32> to vector<16x128xf32>
      %29 = arith.mulf %19, %28 : vector<16x128xf32>
      %c0_16 = arith.constant 0 : index
      %c0_17 = arith.constant 0 : index
      %30 = vector.load %arg3[%c0_16, %c0_17] : memref<1x128xf32, #tpu.memory_space<vmem>>, vector<1x128xf32>
      %31 = vector.broadcast %30 : vector<1x128xf32> to vector<16x128xf32>
      %32 = arith.mulf %29, %31 : vector<16x128xf32>
      %c0_18 = arith.constant 0 : index
      %c0_19 = arith.constant 0 : index
      %33 = vector.load %arg4[%c0_18, %c0_19] : memref<1x128xf32, #tpu.memory_space<vmem>>, vector<1x128xf32>
      %34 = vector.broadcast %33 : vector<1x128xf32> to vector<16x128xf32>
      %35 = arith.addf %32, %34 : vector<16x128xf32>
      %36 = arith.truncf %35 : vector<16x128xf32> to vector<16x128xbf16>
      %c0_20 = arith.constant 0 : index
      %c0_21 = arith.constant 0 : index
      %37 = vector.load %arg8[%c0_20, %c0_21] : memref<16x128xbf16, #tpu.memory_space<vmem>>, vector<16x128xbf16>
      tpu.vector_store %arg8[%c0_20, %c0_21], %36 {strides = array<i32>} : memref<16x128xbf16, #tpu.memory_space<vmem>>, vector<16x128xbf16>,
    } else {
    }
    %c0 = arith.constant 0 : index
    %c0_1 = arith.constant 0 : index
    %3 = vector.load %arg8[%c0, %c0_1] : memref<16x128xbf16, #tpu.memory_space<vmem>>, vector<16x128xbf16>
    %c0_2 = arith.constant 0 : index
    %c0_3 = arith.constant 0 : index
    %4 = vector.load %arg5[%c0_2, %c0_3] : memref<128x256xbf16, #tpu.memory_space<vmem>>, vector<128x256xbf16>
    %cst = arith.constant dense<0.000000e+00> : vector<16x256xf32>
    %5 = tpu.matmul %3, %4, %cst {dimension_numbers = #tpu.dot_dimension_numbers<[1], [0], [0], [1], [0, 0, 1, 1], [], []>} : vector<16x128xbf16>, vector<128x256xbf16>, vector<16x256xf32> -> vector<16x256xf32>
    %c0_4 = arith.constant 0 : index
    %c0_5 = arith.constant 0 : index
    %6 = vector.load %arg6[%c0_4, %c0_5] : memref<1x256xf32, #tpu.memory_space<vmem>>, vector<1x256xf32>
    %7 = vector.broadcast %6 : vector<1x256xf32> to vector<16x256xf32>
    %8 = arith.addf %5, %7 : vector<16x256xf32>
    %cst_6 = arith.constant 0.000000e+00 : f32
    %9 = vector.broadcast %cst_6 : f32 to vector<16x256xf32>
    %10 = arith.maximumf %8, %9 : vector<16x256xf32>
    %11 = arith.truncf %10 : vector<16x256xf32> to vector<16x256xbf16>
    %c0_7 = arith.constant 0 : index
    %c0_8 = arith.constant 0 : index
    %12 = vector.load %arg7[%c0_7, %c0_8] : memref<16x256xbf16, #tpu.memory_space<vmem>>, vector<16x256xbf16>
    tpu.vector_store %arg7[%c0_7, %c0_8], %11 {strides = array<i32>} : memref<16x256xbf16, #tpu.memory_space<vmem>>, vector<16x256xbf16>,
    return
  }
  func.func @transform_0(%arg0: i32, %arg1: i32) -> (i32, i32) {
    %c0_i32 = arith.constant 0 : i32
    %c0_i32_0 = arith.constant 0 : i32
    return %arg0, %c0_i32 : i32, i32
  }
  func.func @transform_1(%arg0: i32, %arg1: i32) -> (i32, i32) {
    %c0_i32 = arith.constant 0 : i32
    %c0_i32_0 = arith.constant 0 : i32
    %c0_i32_1 = arith.constant 0 : i32
    return %c0_i32, %c0_i32_0 : i32, i32
  }
  func.func @transform_2(%arg0: i32, %arg1: i32) -> (i32, i32) {
    %c0_i32 = arith.constant 0 : i32
    %c0_i32_0 = arith.constant 0 : i32
    %c0_i32_1 = arith.constant 0 : i32
    return %c0_i32, %c0_i32_0 : i32, i32
  }
  func.func @transform_3(%arg0: i32, %arg1: i32) -> (i32, i32) {
    %c0_i32 = arith.constant 0 : i32
    %c0_i32_0 = arith.constant 0 : i32
    return %c0_i32, %arg1 : i32, i32
  }
  func.func @transform_4(%arg0: i32, %arg1: i32) -> (i32, i32) {
    %c0_i32 = arith.constant 0 : i32
    %c0_i32_0 = arith.constant 0 : i32
    return %c0_i32, %arg1 : i32, i32
  }
  func.func @transform_5(%arg0: i32, %arg1: i32) -> (i32, i32) {
    %c0_i32 = arith.constant 0 : i32
    return %arg0, %arg1 : i32, i32
  }
}

module attributes {stable_mosaic.version = 11 : i64} {
  func.func @_linear_residual_kernel(%arg0: i32, %arg1: i32, %arg2: i32, %arg3: memref<16x256xbf16, #tpu.memory_space<vmem>>, %arg4: memref<256x128xbf16, #tpu.memory_space<vmem>>, %arg5: memref<1x128xf32, #tpu.memory_space<vmem>>, %arg6: memref<16x128xf32, #tpu.memory_space<vmem>>, %arg7: memref<16x128xf32, #tpu.memory_space<vmem>>, %arg8: memref<16x128xf32, #tpu.memory_space<vmem>>) attributes {dimension_semantics = [#tpu.dimension_semantics<parallel>, #tpu.dimension_semantics<parallel>, #tpu.dimension_semantics<arbitrary>], iteration_bounds = array<i64: 1, 1, 1>, scalar_prefetch = 0 : i64, scratch_operands = 1 : i64, tpu.core_type = #tpu.core_type<tc>, window_params = [{transform_indices = @transform_0, window_bounds = array<i64: 16, 256>}, {transform_indices = @transform_1, window_bounds = array<i64: 256, 128>}, {transform_indices = @transform_2, window_bounds = array<i64: 1, 128>}, {transform_indices = @transform_3, window_bounds = array<i64: 16, 128>}, {transform_indices = @transform_4, window_bounds = array<i64: 16, 128>}]} {
    %c0_i32 = arith.constant 0 : i32
    %0 = arith.cmpi eq, %arg2, %c0_i32 : i32
    %1 = arith.extui %0 : i1 to i32
    %c0_i32_0 = arith.constant 0 : i32
    %2 = arith.cmpi ne, %1, %c0_i32_0 : i32
    scf.if %2 {
      %cst_10 = arith.constant 0.000000e+00 : f32
      %12 = vector.broadcast %cst_10 : f32 to vector<16x128xf32>
      %c0_11 = arith.constant 0 : index
      %c0_12 = arith.constant 0 : index
      %13 = vector.load %arg8[%c0_11, %c0_12] : memref<16x128xf32, #tpu.memory_space<vmem>>, vector<16x128xf32>
      tpu.vector_store %arg8[%c0_11, %c0_12], %12 {strides = array<i32>} : memref<16x128xf32, #tpu.memory_space<vmem>>, vector<16x128xf32>,
    } else {
    }
    %c0 = arith.constant 0 : index
    %c0_1 = arith.constant 0 : index
    %3 = vector.load %arg8[%c0, %c0_1] : memref<16x128xf32, #tpu.memory_space<vmem>>, vector<16x128xf32>
    %c0_2 = arith.constant 0 : index
    %c0_3 = arith.constant 0 : index
    %4 = vector.load %arg3[%c0_2, %c0_3] : memref<16x256xbf16, #tpu.memory_space<vmem>>, vector<16x256xbf16>
    %c0_4 = arith.constant 0 : index
    %c0_5 = arith.constant 0 : index
    %5 = vector.load %arg4[%c0_4, %c0_5] : memref<256x128xbf16, #tpu.memory_space<vmem>>, vector<256x128xbf16>
    %cst = arith.constant dense<0.000000e+00> : vector<16x128xf32>
    %6 = tpu.matmul %4, %5, %cst {dimension_numbers = #tpu.dot_dimension_numbers<[1], [0], [0], [1], [0, 0, 1, 1], [], []>} : vector<16x256xbf16>, vector<256x128xbf16>, vector<16x128xf32> -> vector<16x128xf32>
    %7 = arith.addf %3, %6 : vector<16x128xf32>
    %c0_6 = arith.constant 0 : index
    %c0_7 = arith.constant 0 : index
    %8 = vector.load %arg8[%c0_6, %c0_7] : memref<16x128xf32, #tpu.memory_space<vmem>>, vector<16x128xf32>
    tpu.vector_store %arg8[%c0_6, %c0_7], %7 {strides = array<i32>} : memref<16x128xf32, #tpu.memory_space<vmem>>, vector<16x128xf32>,
    %c0_i32_8 = arith.constant 0 : i32
    %9 = arith.cmpi eq, %arg2, %c0_i32_8 : i32
    %10 = arith.extui %9 : i1 to i32
    %c0_i32_9 = arith.constant 0 : i32
    %11 = arith.cmpi ne, %10, %c0_i32_9 : i32
    scf.if %11 {
      %c0_10 = arith.constant 0 : index
      %c0_11 = arith.constant 0 : index
      %12 = vector.load %arg8[%c0_10, %c0_11] : memref<16x128xf32, #tpu.memory_space<vmem>>, vector<16x128xf32>
      %c0_12 = arith.constant 0 : index
      %c0_13 = arith.constant 0 : index
      %13 = vector.load %arg5[%c0_12, %c0_13] : memref<1x128xf32, #tpu.memory_space<vmem>>, vector<1x128xf32>
      %14 = vector.broadcast %13 : vector<1x128xf32> to vector<16x128xf32>
      %15 = arith.addf %12, %14 : vector<16x128xf32>
      %c0_14 = arith.constant 0 : index
      %c0_15 = arith.constant 0 : index
      %16 = vector.load %arg6[%c0_14, %c0_15] : memref<16x128xf32, #tpu.memory_space<vmem>>, vector<16x128xf32>
      %17 = arith.addf %15, %16 : vector<16x128xf32>
      %c0_16 = arith.constant 0 : index
      %c0_17 = arith.constant 0 : index
      %18 = vector.load %arg7[%c0_16, %c0_17] : memref<16x128xf32, #tpu.memory_space<vmem>>, vector<16x128xf32>
      tpu.vector_store %arg7[%c0_16, %c0_17], %17 {strides = array<i32>} : memref<16x128xf32, #tpu.memory_space<vmem>>, vector<16x128xf32>,
    } else {
    }
    return
  }
  func.func @transform_0(%arg0: i32, %arg1: i32, %arg2: i32) -> (i32, i32) {
    %c0_i32 = arith.constant 0 : i32
    return %arg0, %arg2 : i32, i32
  }
  func.func @transform_1(%arg0: i32, %arg1: i32, %arg2: i32) -> (i32, i32) {
    %c0_i32 = arith.constant 0 : i32
    return %arg2, %arg1 : i32, i32
  }
  func.func @transform_2(%arg0: i32, %arg1: i32, %arg2: i32) -> (i32, i32) {
    %c0_i32 = arith.constant 0 : i32
    %c0_i32_0 = arith.constant 0 : i32
    return %c0_i32, %arg1 : i32, i32
  }
  func.func @transform_3(%arg0: i32, %arg1: i32, %arg2: i32) -> (i32, i32) {
    %c0_i32 = arith.constant 0 : i32
    return %arg0, %arg1 : i32, i32
  }
  func.func @transform_4(%arg0: i32, %arg1: i32, %arg2: i32) -> (i32, i32) {
    %c0_i32 = arith.constant 0 : i32
    return %arg0, %arg1 : i32, i32
  }
}

module attributes {stable_mosaic.version = 11 : i64} {
  func.func @_layernorm_kernel(%arg0: i32, %arg1: memref<16x128xf32, #tpu.memory_space<vmem>>, %arg2: memref<1x128xf32, #tpu.memory_space<vmem>>, %arg3: memref<1x128xf32, #tpu.memory_space<vmem>>, %arg4: memref<16x128xf32, #tpu.memory_space<vmem>>) attributes {dimension_semantics = [#tpu.dimension_semantics<parallel>], iteration_bounds = array<i64: 1>, scalar_prefetch = 0 : i64, scratch_operands = 0 : i64, tpu.core_type = #tpu.core_type<tc>, window_params = [{transform_indices = @transform_0, window_bounds = array<i64: 16, 128>}, {pipeline_mode = #tpu.pipeline_mode<synchronous>, transform_indices = @transform_1, window_bounds = array<i64: 1, 128>}, {pipeline_mode = #tpu.pipeline_mode<synchronous>, transform_indices = @transform_2, window_bounds = array<i64: 1, 128>}, {transform_indices = @transform_3, window_bounds = array<i64: 16, 128>}]} {
    %c0 = arith.constant 0 : index
    %c0_0 = arith.constant 0 : index
    %0 = vector.load %arg1[%c0, %c0_0] : memref<16x128xf32, #tpu.memory_space<vmem>>, vector<16x128xf32>
    %cst = arith.constant dense<0.000000e+00> : vector<16xf32>
    %1 = vector.multi_reduction <add>, %0, %cst [1] : vector<16x128xf32> to vector<16xf32>
    %2 = vector.shape_cast %1 : vector<16xf32> to vector<16x1xf32>
    %cst_1 = arith.constant 1.280000e+02 : f32
    %3 = vector.broadcast %cst_1 : f32 to vector<16x1xf32>
    %4 = arith.divf %2, %3 : vector<16x1xf32>
    %5 = vector.broadcast %4 : vector<16x1xf32> to vector<16x128xf32>
    %6 = arith.subf %0, %5 : vector<16x128xf32>
    %7 = arith.mulf %6, %6 : vector<16x128xf32>
    %cst_2 = arith.constant dense<0.000000e+00> : vector<16xf32>
    %8 = vector.multi_reduction <add>, %7, %cst_2 [1] : vector<16x128xf32> to vector<16xf32>
    %9 = vector.shape_cast %8 : vector<16xf32> to vector<16x1xf32>
    %cst_3 = arith.constant 1.280000e+02 : f32
    %10 = vector.broadcast %cst_3 : f32 to vector<16x1xf32>
    %11 = arith.divf %9, %10 : vector<16x1xf32>
    %cst_4 = arith.constant 9.99999974E-6 : f32
    %12 = vector.broadcast %cst_4 : f32 to vector<16x1xf32>
    %13 = arith.addf %11, %12 : vector<16x1xf32>
    %14 = math.rsqrt %13 : vector<16x1xf32>
    %15 = vector.broadcast %14 : vector<16x1xf32> to vector<16x128xf32>
    %16 = arith.mulf %6, %15 : vector<16x128xf32>
    %c0_5 = arith.constant 0 : index
    %c0_6 = arith.constant 0 : index
    %17 = vector.load %arg2[%c0_5, %c0_6] : memref<1x128xf32, #tpu.memory_space<vmem>>, vector<1x128xf32>
    %18 = vector.broadcast %17 : vector<1x128xf32> to vector<16x128xf32>
    %19 = arith.mulf %16, %18 : vector<16x128xf32>
    %c0_7 = arith.constant 0 : index
    %c0_8 = arith.constant 0 : index
    %20 = vector.load %arg3[%c0_7, %c0_8] : memref<1x128xf32, #tpu.memory_space<vmem>>, vector<1x128xf32>
    %21 = vector.broadcast %20 : vector<1x128xf32> to vector<16x128xf32>
    %22 = arith.addf %19, %21 : vector<16x128xf32>
    %c0_9 = arith.constant 0 : index
    %c0_10 = arith.constant 0 : index
    %23 = vector.load %arg4[%c0_9, %c0_10] : memref<16x128xf32, #tpu.memory_space<vmem>>, vector<16x128xf32>
    tpu.vector_store %arg4[%c0_9, %c0_10], %22 {strides = array<i32>} : memref<16x128xf32, #tpu.memory_space<vmem>>, vector<16x128xf32>,
    return
  }
  func.func @transform_0(%arg0: i32) -> (i32, i32) {
    %c0_i32 = arith.constant 0 : i32
    %c0_i32_0 = arith.constant 0 : i32
    return %arg0, %c0_i32 : i32, i32
  }
  func.func @transform_1(%arg0: i32) -> (i32, i32) {
    %c0_i32 = arith.constant 0 : i32
    %c0_i32_0 = arith.constant 0 : i32
    %c0_i32_1 = arith.constant 0 : i32
    return %c0_i32, %c0_i32_0 : i32, i32
  }
  func.func @transform_2(%arg0: i32) -> (i32, i32) {
    %c0_i32 = arith.constant 0 : i32
    %c0_i32_0 = arith.constant 0 : i32
    %c0_i32_1 = arith.constant 0 : i32
    return %c0_i32, %c0_i32_0 : i32, i32
  }
  func.func @transform_3(%arg0: i32) -> (i32, i32) {
    %c0_i32 = arith.constant 0 : i32
    %c0_i32_0 = arith.constant 0 : i32
    return %arg0, %c0_i32 : i32, i32
  }
}

</mosaic_0001>

<bundles_post_ra>
// kernel: transformer_encoder.13
= control target key start
LH: loop header
LB: loop body
LE: loop exit
PB: predicated region body
PF: predicated region fallthrough
CT: control target
= control target key end

     0   :  { %9 = vsyncpa [#allocation4], 0  ;;  %s529_s0 = inlined_call_operand.hbm [shape: bf16[16,128], index: 0, kind: input, shape index: {}]   ;;  %s530_s1 = inlined_call_operand.hbm [shape: bf16[128,128], index: 1, kind: input, shape index: {}]   ;;  %s531_s2 = inlined_call_operand.hbm [shape: f32[1,128], index: 2, kind: input, shape index: {}]   ;;  %s532_s3 = inlined_call_operand.hbm [shape: f32[16,128], index: 3, kind: input, shape index: {}]   ;;  %s533_s4 = inlined_call_operand.hbm [shape: f32[16,128], index: 4, kind: output, shape index: {}]  }
   0x1   :  { %10 = vsyncpa [#allocation7], 0 }
   0x2   :  { %11 = vsyncpa [#allocation10], 0 }
   0x3   :  { %12 = vsyncpa [#allocation5], 0  ;;  %s413_s15 = smov [#allocation6]   ;;  %s414_s17 = smov [#allocation3]  }
   0x4   :  { %s30_s16 = sshll.u32 %s413_s15, 4  ;;  %s18_s18 = sshll.u32 %s414_s17, 4  ;;  %s31_s16 = int_to_ptr.vmem [resolvable:$true] %s30_s16  ;;  %s449_s18 = int_to_ptr.vmem [resolvable:$true] %s18_s18 }
   0x5   :  { %s295_s21 = scalar_lea.hbm %s530_s1, 1024 }
   0x6   :  { %p296_p0 = scmp.ne.s32.totalorder %s530_s1, %s295_s21  ;;  %p299_p1 = scmp.lt.u32.totalorder %s295_s21, %s530_s1 }
   0x8   :  { %p301_p2 = pnand %p299_p1, %p296_p0 }
   0xa   :  { %304 = shalt.err (!%p301_p2)
}
   0xb   :  { %s305_s26 = scalar_lea.vmem %s31_s16, 1024  ;;  %p310_p4 = scmp.lt.s32.totalorder %s31_s16, %s31_s16 }
   0xc   :  { %p306_p3 = scmp.ne.s32.totalorder %s31_s16, %s305_s26  ;;  %p311_p5 = scmp.lt.s32.totalorder %s305_s26, %s305_s26 }
   0xe   :  { %p312_p6 = por %p311_p5, %p310_p4 }
  0x10   :  { %p313_p7 = pnand %p312_p6, %p306_p3 }
  0x12   :  { %316 = shalt.err (!%p313_p7)
}
  0x13   :  { %s415_s27 = smov 64   ;;  %s416_s28 = smov 4  }
  0x14   :  { %36 = dma.hbm_to_vmem [thread:$0]  %s530_s1, 1024, %s31_s16, [#allocation7], %s415_s27, %s415_s27, %s416_s28  }
  0x15   :  { %s317_s7 = scalar_lea.hbm %s529_s0, 128 }
  0x16   :  { %p318_p8 = scmp.ne.s32.totalorder %s529_s0, %s317_s7  ;;  %p321_p9 = scmp.lt.u32.totalorder %s317_s7, %s529_s0 }
  0x18   :  { %p323_p10 = pnand %p321_p9, %p318_p8 }
  0x1a   :  { %326 = shalt.err (!%p323_p10)
}
  0x1b   :  { %s327_s12 = scalar_lea.vmem %s449_s18, 128  ;;  %p332_p12 = scmp.lt.s32.totalorder %s449_s18, %s449_s18 }
  0x1c   :  { %p328_p11 = scmp.ne.s32.totalorder %s449_s18, %s327_s12  ;;  %p333_p13 = scmp.lt.s32.totalorder %s327_s12, %s327_s12 }
  0x1e   :  { %p334_p0 = por %p333_p13, %p332_p12 }
  0x20   :  { %p335_p1 = pnand %p334_p0, %p328_p11 }
  0x22   :  { %338 = shalt.err (!%p335_p1)
}
  0x23   :  { %24 = dma.hbm_to_vmem [thread:$0]  %s529_s0, 128, %s449_s18, [#allocation4], %s415_s27, %s415_s27, %s416_s28  }
  0x24   :  { %s417_s14 = smov [#allocation8]   ;;  %s418_s16 = smov [#allocation9]  }
  0x25   :  { %s43_s15 = sshll.u32 %s417_s14, 4  ;;  %s52_s17 = sshll.u32 %s418_s16, 4  ;;  %s44_s15 = int_to_ptr.vmem [resolvable:$true] %s43_s15  ;;  %s480_s17 = int_to_ptr.vmem [resolvable:$true] %s52_s17 }
  0x26   :  { %s339_s21 = scalar_lea.hbm %s531_s2, 16 }
  0x27   :  { %p340_p2 = scmp.ne.s32.totalorder %s531_s2, %s339_s21  ;;  %p343_p3 = scmp.lt.u32.totalorder %s339_s21, %s531_s2 }
  0x29   :  { %p345_p4 = pnand %p343_p3, %p340_p2 }
  0x2b   :  { %348 = shalt.err (!%p345_p4)
}
  0x2c   :  { %s349_s0 = scalar_lea.vmem %s44_s15, 16  ;;  %s353_s18 = scalar_lea.vmem %s44_s15, 32 }
  0x2d   :  { %p350_p5 = scmp.ne.s32.totalorder %s44_s15, %s349_s0  ;;  %p354_p6 = scmp.lt.s32.totalorder %s44_s15, %s44_s15 }
  0x2e   :  { %p355_p7 = scmp.lt.s32.totalorder %s353_s18, %s349_s0 }
  0x30   :  { %p356_p8 = por %p355_p7, %p354_p6 }
  0x32   :  { %p357_p9 = pnand %p356_p8, %p350_p5 }
  0x34   :  { %360 = shalt.err (!%p357_p9)
}
  0x35   :  { %46 = dma.hbm_to_vmem [thread:$0]  %s531_s2, 16, %s44_s15, [#allocation7]  }
  0x36   :  { %s361_s30 = scalar_lea.hbm %s532_s3, 256 }
  0x37   :  { %p362_p10 = scmp.ne.s32.totalorder %s532_s3, %s361_s30  ;;  %p365_p11 = scmp.lt.u32.totalorder %s361_s30, %s532_s3 }
  0x39   :  { %p367_p12 = pnand %p365_p11, %p362_p10 }
  0x3b   :  { %370 = shalt.err (!%p367_p12)
}
  0x3c   :  { %s371_s9 = scalar_lea.vmem %s480_s17, 256  ;;  %p376_p0 = scmp.lt.s32.totalorder %s480_s17, %s480_s17 }
  0x3d   :  { %p372_p13 = scmp.ne.s32.totalorder %s480_s17, %s371_s9  ;;  %p377_p1 = scmp.lt.s32.totalorder %s371_s9, %s371_s9 }
  0x3f   :  { %p378_p2 = por %p377_p1, %p376_p0 }
  0x41   :  { %p379_p3 = pnand %p378_p2, %p372_p13 }
  0x43   :  { %382 = shalt.err (!%p379_p3)
}
  0x44   :  { %s419_s2 = smov 128   ;;  %s420_s10 = smov 8  }
  0x45   :  { %58 = dma.hbm_to_vmem [thread:$0]  %s532_s3, 256, %s480_s17, [#allocation10], %s419_s2, %s419_s2, %s420_s10  }
  0x46   :  { %405 = dma.done.wait [#allocation4], 128  }
  0x47   :  { %406 = vsyncadd [#allocation4], 4294967168 }
  0x48   :  { %407 = dma.done.wait [#allocation7], 1040  }
  0x49   :  { %408 = vsyncadd [#allocation7], 4294966256 }
  0x4a   :  { %409 = dma.done.wait [#allocation10], 256  }
  0x4b   :  { %410 = vsyncadd [#allocation10], 4294967040  ;;  %v421_v0 = vmov 0.0   ;;  %vm422_vm0 = vmmov 0   ;;  %v286_v1 = vld [vmem:[#allocation6] sm:$0xff]   ;;  %v287_v2 = vld [vmem:[#allocation6 + $0x8] sm:$0xff]  }
  0x4c   :  { %255 = vmatprep.subr.bf16.mxu0 %v421_v0  ;;  %271 = vmatprep.mubr.msk.bf16.mxu0 %vm422_vm0, %v421_v0  ;;  %v288_v3 = vld [vmem:[#allocation6 + $0x10] sm:$0xff]   ;;  %v289_v4 = vld [vmem:[#allocation6 + $0x18] sm:$0xff]   ;;  %v290_v5 = vld [vmem:[#allocation6 + $0x20] sm:$0xff]   ;;  %s423_s3 = smov [#allocation11]  }
  0x4d   :  { %256 = vmatpush3.bf16.msra.mxu0 %v286_v1  ;;  %v291_v6 = vld [vmem:[#allocation6 + $0x28] sm:$0xff]   ;;  %v292_v7 = vld [vmem:[#allocation6 + $0x30] sm:$0xff]   ;;  %v293_v8 = vld [vmem:[#allocation6 + $0x38] sm:$0xff]   ;;  %s222_s1 = sshll.u32 %s423_s3, 4  ;;  %s223_s1 = int_to_ptr.vmem [resolvable:$true] %s222_s1 }
  0x4e   :  { %257 = vmatprep.subr.bf16.mxu0 %v421_v0  ;;  %v294_v9 = vld [vmem:[#allocation3] sm:$0xff]   ;;  %v245_v10 = vld [vmem:[#allocation8] ss:$0 sm:$0xff]  ;;  %v211_v12 = vld [vmem:[#allocation9] sm:$0xff]  ;;  %s383_s13 = scalar_lea.vmem %s223_s1, 256  ;;  %p388_p5 = scmp.lt.s32.totalorder %s223_s1, %s223_s1 }
  0x4f   :  { %v212_v16 = vld [vmem:[#allocation9 + $0x8] sm:$0xff]  ;;  %p384_p4 = scmp.ne.s32.totalorder %s223_s1, %s383_s13  ;;  %p389_p6 = scmp.lt.s32.totalorder %s383_s13, %s383_s13 }
  0x51   :  { %258 = vmatpush3.bf16.msra.mxu0 %v287_v2  ;;  %p390_p7 = por %p389_p6, %p388_p5 }
  0x52   :  { %259 = vmatprep.subr.bf16.mxu0 %v421_v0 }
  0x53   :  { %p391_p8 = pnand %p390_p7, %p384_p4 }
  0x55   :  { %260 = vmatpush3.bf16.msra.mxu0 %v288_v3 }
  0x56   :  { %261 = vmatprep.subr.bf16.mxu0 %v421_v0 }
  0x59   :  { %262 = vmatpush3.bf16.msra.mxu0 %v289_v4 }
  0x5a   :  { %263 = vmatprep.subr.bf16.mxu0 %v421_v0 }
  0x5d   :  { %264 = vmatpush3.bf16.msra.mxu0 %v290_v5 }
  0x5e   :  { %265 = vmatprep.subr.bf16.mxu0 %v421_v0 }
  0x61   :  { %266 = vmatpush3.bf16.msra.mxu0 %v291_v6 }
  0x62   :  { %267 = vmatprep.subr.bf16.mxu0 %v421_v0 }
  0x65   :  { %268 = vmatpush3.bf16.msra.mxu0 %v292_v7 }
  0x66   :  { %269 = vmatprep.subr.bf16.mxu0 %v421_v0 }
  0x69   :  { %270 = vmatpush3.bf16.msra.mxu0 %v293_v8 }
  0x6c   :  { %272 = vmatmul.mubr.bf16.vlgmr.msra.gmra.mrb[0].mxu0 %v294_v9 }
 0x13f   :  { %v186_v11 = vpop.f32.mrb[0].mxu0 }
 0x140   :  { %v209_v13 = vadd.f32 %v245_v10, %v186_v11  ;;  %v273_v14 = vpop.f32.mrb[1].mxu0 }
 0x141   :  { %v189_v15 = vpop.f32.mrb[2].mxu0 }
 0x142   :  { %v213_v17 = vadd.f32 %v211_v12, %v209_v13  ;;  %v210_v18 = vadd.f32 %v245_v10, %v189_v15  ;;  %v274_v19 = vpop.f32.mrb[3].mxu0 }
 0x144   :  { %215 = vst [vmem:[#allocation11] sm:$0xff] %v213_v17  ;;  %v214_v20 = vadd.f32 %v212_v16, %v210_v18 }
 0x146   :  { %216 = vst [vmem:[#allocation11 + $0x8] sm:$0xff] %v214_v20 }
 0x147   :  { %394 = shalt.err (!%p391_p8)
}
 0x148   :  { %s395_s16 = scalar_lea.hbm %s533_s4, 256 }
 0x149   :  { %p396_p9 = scmp.ne.s32.totalorder %s533_s4, %s395_s16  ;;  %p399_p10 = scmp.lt.u32.totalorder %s395_s16, %s533_s4 }
 0x14b   :  { %p401_p11 = pnand %p399_p10, %p396_p9 }
 0x14d   :  { %404 = shalt.err (!%p401_p11)
}
 0x14e   :  { %228 = dma.vmem_to_hbm [thread:$0]  %s223_s1, 256, %s533_s4, [#allocation5], %s419_s2, %s419_s2, %s420_s10  }
 0x14f   :  { %411 = dma.done.wait [#allocation5], 256  }
 0x150   :  { %412 = vsyncadd [#allocation5], 4294967040 }
 0x151   :  { %232 = vsyncpa [#allocation4], 1 }
 0x152   :  { %233 = vsyncpa [#allocation7], 1 }
 0x153   :  { %234 = vsyncpa [#allocation10], 1 }
 0x154   :  { %235 = vsyncpa [#allocation5], 1 }

// kernel: transformer_encoder.11
= control target key start
LH: loop header
LB: loop body
LE: loop exit
PB: predicated region body
PF: predicated region fallthrough
CT: control target
= control target key end

     0   :  { %10 = vsyncpa [#allocation4], 0  ;;  %s837_s0 = inlined_call_operand.hbm [shape: f32[16,128], index: 0, kind: input, shape index: {}]   ;;  %s838_s1 = inlined_call_operand.hbm [shape: f32[1,128], index: 1, kind: input, shape index: {}]   ;;  %s839_s2 = inlined_call_operand.hbm [shape: f32[1,128], index: 2, kind: input, shape index: {}]   ;;  %s840_s3 = inlined_call_operand.hbm [shape: bf16[128,384], index: 3, kind: input, shape index: {}]   ;;  %s841_s4 = inlined_call_operand.hbm [shape: f32[1,384], index: 4, kind: input, shape index: {}]   ;;  %s842_s5 = inlined_call_operand.hbm [shape: bf16[16,384], index: 5, kind: output, shape index: {}]  }
   0x1   :  { %11 = vsyncpa [#allocation7], 0 }
   0x2   :  { %12 = vsyncpa [#allocation10], 0 }
   0x3   :  { %13 = vsyncpa [#allocation5], 0  ;;  %s690_s18 = smov [#allocation6]   ;;  %s691_s20 = smov [#allocation9]  }
   0x4   :  { %s32_s19 = sshll.u32 %s690_s18, 4  ;;  %s51_s21 = sshll.u32 %s691_s20, 4  ;;  %s33_s19 = int_to_ptr.vmem [resolvable:$true] %s32_s19  ;;  %s733_s21 = int_to_ptr.vmem [resolvable:$true] %s51_s21 }
   0x5   :  { %s550_s24 = scalar_lea.hbm %s838_s1, 16 }
   0x6   :  { %p551_p0 = scmp.ne.s32.totalorder %s838_s1, %s550_s24  ;;  %p554_p1 = scmp.lt.u32.totalorder %s550_s24, %s838_s1 }
   0x8   :  { %p556_p2 = pnand %p554_p1, %p551_p0 }
   0xa   :  { %559 = shalt.err (!%p556_p2)
}
   0xb   :  { %s560_s29 = scalar_lea.vmem %s33_s19, 16  ;;  %s564_s30 = scalar_lea.vmem %s33_s19, 32 }
   0xc   :  { %p561_p3 = scmp.ne.s32.totalorder %s33_s19, %s560_s29  ;;  %p565_p4 = scmp.lt.s32.totalorder %s33_s19, %s33_s19 }
   0xd   :  { %p566_p5 = scmp.lt.s32.totalorder %s564_s30, %s560_s29 }
   0xf   :  { %p567_p6 = por %p566_p5, %p565_p4 }
  0x11   :  { %p568_p7 = pnand %p567_p6, %p561_p3 }
  0x13   :  { %571 = shalt.err (!%p568_p7)
}
  0x14   :  { %35 = dma.hbm_to_vmem [thread:$0]  %s838_s1, 16, %s33_s19, [#allocation7]  }
  0x15   :  { %s572_s10 = scalar_lea.hbm %s840_s3, 3072 }
  0x16   :  { %p573_p8 = scmp.ne.s32.totalorder %s840_s3, %s572_s10  ;;  %p576_p9 = scmp.lt.u32.totalorder %s572_s10, %s840_s3 }
  0x18   :  { %p578_p10 = pnand %p576_p9, %p573_p8 }
  0x1a   :  { %581 = shalt.err (!%p578_p10)
}
  0x1b   :  { %s582_s15 = scalar_lea.vmem %s733_s21, 3072  ;;  %p587_p12 = scmp.lt.s32.totalorder %s733_s21, %s733_s21 }
  0x1c   :  { %p583_p11 = scmp.ne.s32.totalorder %s733_s21, %s582_s15  ;;  %p588_p13 = scmp.lt.s32.totalorder %s582_s15, %s582_s15 }
  0x1e   :  { %p589_p0 = por %p588_p13, %p587_p12 }
  0x20   :  { %p590_p1 = pnand %p589_p0, %p583_p11 }
  0x22   :  { %593 = shalt.err (!%p590_p1)
}
  0x23   :  { %s692_s1 = smov 192   ;;  %s693_s16 = smov 12  }
  0x24   :  { %57 = dma.hbm_to_vmem [thread:$0]  %s840_s3, 3072, %s733_s21, [#allocation10], %s692_s1, %s692_s1, %s693_s16  }
  0x25   :  { %s694_s19 = smov [#allocation3]   ;;  %s594_s24 = scalar_lea.hbm %s837_s0, 256 }
  0x26   :  { %s19_s20 = sshll.u32 %s694_s19, 4  ;;  %p595_p2 = scmp.ne.s32.totalorder %s837_s0, %s594_s24  ;;  %s20_s20 = int_to_ptr.vmem [resolvable:$true] %s19_s20 }
  0x27   :  { %p598_p3 = scmp.lt.u32.totalorder %s594_s24, %s837_s0 }
  0x29   :  { %p600_p4 = pnand %p598_p3, %p595_p2 }
  0x2b   :  { %603 = shalt.err (!%p600_p4)
}
  0x2c   :  { %s604_s29 = scalar_lea.vmem %s20_s20, 256  ;;  %p609_p6 = scmp.lt.s32.totalorder %s20_s20, %s20_s20 }
  0x2d   :  { %p605_p5 = scmp.ne.s32.totalorder %s20_s20, %s604_s29  ;;  %p610_p7 = scmp.lt.s32.totalorder %s604_s29, %s604_s29 }
  0x2f   :  { %p611_p8 = por %p610_p7, %p609_p6 }
  0x31   :  { %p612_p9 = pnand %p611_p8, %p605_p5 }
  0x33   :  { %615 = shalt.err (!%p612_p9)
}
  0x34   :  { %s695_s3 = smov 128   ;;  %s696_s21 = smov 8  }
  0x35   :  { %25 = dma.hbm_to_vmem [thread:$0]  %s837_s0, 256, %s20_s20, [#allocation4], %s695_s3, %s695_s3, %s696_s21  }
  0x36   :  { %s697_s7 = smov [#allocation8]   ;;  %s698_s9 = smov [#allocation11]  }
  0x37   :  { %s42_s8 = sshll.u32 %s697_s7, 4  ;;  %s64_s10 = sshll.u32 %s698_s9, 4  ;;  %s43_s8 = int_to_ptr.vmem [resolvable:$true] %s42_s8  ;;  %s65_s10 = int_to_ptr.vmem [resolvable:$true] %s64_s10 }
  0x38   :  { %s616_s13 = scalar_lea.hbm %s839_s2, 16 }
  0x39   :  { %p617_p10 = scmp.ne.s32.totalorder %s839_s2, %s616_s13  ;;  %p620_p11 = scmp.lt.u32.totalorder %s616_s13, %s839_s2 }
  0x3b   :  { %p622_p12 = pnand %p620_p11, %p617_p10 }
  0x3d   :  { %625 = shalt.err (!%p622_p12)
}
  0x3e   :  { %s626_s0 = scalar_lea.vmem %s43_s8, 16  ;;  %s630_s19 = scalar_lea.vmem %s43_s8, 32 }
  0x3f   :  { %p627_p13 = scmp.ne.s32.totalorder %s43_s8, %s626_s0  ;;  %p631_p0 = scmp.lt.s32.totalorder %s43_s8, %s43_s8 }
  0x40   :  { %p632_p1 = scmp.lt.s32.totalorder %s630_s19, %s626_s0 }
  0x42   :  { %p633_p2 = por %p632_p1, %p631_p0 }
  0x44   :  { %p634_p3 = pnand %p633_p2, %p627_p13 }
  0x46   :  { %637 = shalt.err (!%p634_p3)
}
  0x47   :  { %45 = dma.hbm_to_vmem [thread:$0]  %s839_s2, 16, %s43_s8, [#allocation7]  }
  0x48   :  { %s638_s25 = scalar_lea.hbm %s841_s4, 48 }
  0x49   :  { %p639_p4 = scmp.ne.s32.totalorder %s841_s4, %s638_s25  ;;  %p642_p5 = scmp.lt.u32.totalorder %s638_s25, %s841_s4 }
  0x4b   :  { %p644_p6 = pnand %p642_p5, %p639_p4 }
  0x4d   :  { %647 = shalt.err (!%p644_p6)
}
  0x4e   :  { %s648_s3 = scalar_lea.vmem %s65_s10, 48  ;;  %s652_s21 = scalar_lea.vmem %s65_s10, 64 }
  0x4f   :  { %p649_p7 = scmp.ne.s32.totalorder %s65_s10, %s648_s3  ;;  %p653_p8 = scmp.lt.s32.totalorder %s65_s10, %s65_s10 }
  0x50   :  { %p654_p9 = scmp.lt.s32.totalorder %s652_s21, %s648_s3 }
  0x52   :  { %p655_p10 = por %p654_p9, %p653_p8 }
  0x54   :  { %p656_p11 = pnand %p655_p10, %p649_p7 }
  0x56   :  { %659 = shalt.err (!%p656_p11)
}
  0x57   :  { %67 = dma.hbm_to_vmem [thread:$0]  %s841_s4, 48, %s65_s10, [#allocation10]  }
  0x58   :  { %682 = dma.done.wait [#allocation4], 256  }
  0x59   :  { %683 = vsyncadd [#allocation4], 4294967040 }
  0x5a   :  { %684 = dma.done.wait [#allocation7], 32  }
  0x5b   :  { %685 = vsyncadd [#allocation7], 4294967264 }
  0x5c   :  { %686 = dma.done.wait [#allocation10], 3120  }
  0x5d   :  { %687 = vsyncadd [#allocation10], 4294964176  ;;  %v88_v0 = vld [vmem:[#allocation3] sm:$0xff]  ;;  %v89_v1 = vld [vmem:[#allocation3 + $0x8] sm:$0xff]  ;;  %v699_v4 = vmov 0.0   ;;  %v700_v30 = vmov 0   ;;  %v168_v53 = vlaneseq }
  0x5e   :  { %90 = vadd.xlane.f32.xlu0 %v88_v0  ;;  %v514_v2 = vld [vmem:[#allocation9 + $0x4] ss:$12 sps:$4 sm:$0xff]   ;;  %v516_v3 = vld [vmem:[#allocation9] ss:$12 sps:$4 sm:$0xff]   ;;  %481 = vmatprep.subr.bf16.mxu1 %v699_v4  ;;  %v517_v5 = vld [vmem:[#allocation9 + $0x8] ss:$12 sps:$4 sm:$0xff]  }
  0x5f   :  { %v518_v6 = vld [vmem:[#allocation9 + $0x1c] ss:$12 sps:$4 sm:$0xff]   ;;  %311 = vmatprep.subr.bf16.mxu0 %v514_v2  ;;  %482 = vmatpush3.bf16.msra.mxu1 %v517_v5  ;;  %v520_v15 = vld [vmem:[#allocation9 + $0x18] ss:$12 sps:$4 sm:$0xff]   ;;  %v521_v16 = vld [vmem:[#allocation9 + $0x20] ss:$12 sps:$4 sm:$0xff]  }
  0x60   :  { %312 = vmatpush1.bf16.msra.mxu0 %v516_v3  ;;  %483 = vmatprep.subr.bf16.mxu1 %v699_v4  ;;  %v522_v17 = vld [vmem:[#allocation9 + $0x34] ss:$12 sps:$4 sm:$0xff]   ;;  %v524_v18 = vld [vmem:[#allocation9 + $0x30] ss:$12 sps:$4 sm:$0xff]   ;;  %v525_v19 = vld [vmem:[#allocation9 + $0x38] ss:$12 sps:$4 sm:$0xff]  }
  0x61   :  { %313 = vmatprep.subr.bf16.mxu0 %v518_v6  ;;  %v526_v20 = vld [vmem:[#allocation9 + $0x4c] ss:$12 sps:$4 sm:$0xff]   ;;  %v528_v21 = vld [vmem:[#allocation9 + $0x48] ss:$12 sps:$4 sm:$0xff]   ;;  %v529_v22 = vld [vmem:[#allocation9 + $0x50] ss:$12 sps:$4 sm:$0xff]   ;;  %343 = vmatprep.mubr.bf16.mxu0 %v700_v30 }
  0x62   :  { %92 = vadd.xlane.f32.xlu0 %v89_v1  ;;  %v530_v23 = vld [vmem:[#allocation9 + $0x64] ss:$12 sps:$4 sm:$0xff]   ;;  %v532_v24 = vld [vmem:[#allocation9 + $0x60] ss:$12 sps:$4 sm:$0xff]   ;;  %v533_v25 = vld [vmem:[#allocation9 + $0x68] ss:$12 sps:$4 sm:$0xff]  }
  0x63   :  { %484 = vmatpush3.bf16.msra.mxu1 %v521_v16  ;;  %v534_v26 = vld [vmem:[#allocation9 + $0x7c] ss:$12 sps:$4 sm:$0xff]   ;;  %v536_v27 = vld [vmem:[#allocation9 + $0x78] ss:$12 sps:$4 sm:$0xff]   ;;  %v537_v28 = vld [vmem:[#allocation9 + $0x80] ss:$12 sps:$4 sm:$0xff]  }
  0x64   :  { %314 = vmatpush1.bf16.msra.mxu0 %v520_v15  ;;  %485 = vmatprep.subr.bf16.mxu1 %v699_v4  ;;  %v538_v29 = vld [vmem:[#allocation9 + $0x94] ss:$12 sps:$4 sm:$0xff]   ;;  %vm701_vm0 = vmmov 0   ;;  %v540_v31 = vld [vmem:[#allocation9 + $0x90] ss:$12 sps:$4 sm:$0xff]   ;;  %v169_v54 = vshrl.u32 %v168_v53, 7 }
  0x65   :  { %315 = vmatprep.subr.bf16.mxu0 %v522_v17  ;;  %497 = vmatprep.mubr.msk.bf16.mxu1 %vm701_vm0, %v699_v4  ;;  %v541_v32 = vld [vmem:[#allocation9 + $0x98] ss:$12 sps:$4 sm:$0xff]   ;;  %v544_v34 = vld [vmem:[#allocation9 + $0xa8] ss:$12 sps:$4 sm:$0xff]   ;;  %v545_v35 = vld [vmem:[#allocation9 + $0xb0] ss:$12 sps:$4 sm:$0xff]  }
  0x66   :  { %v542_v33 = vld [vmem:[#allocation9 + $0xac] ss:$12 sps:$4 sm:$0xff]   ;;  %v438_v44 = vld [vmem:[#allocation6] ss:$0 sm:$0xff]  ;;  %v439_v48 = vld [vmem:[#allocation8] ss:$0 sm:$0xff] }
  0x67   :  { %486 = vmatpush3.bf16.msra.mxu1 %v525_v19  ;;  %v170_v55 = vsub.s32 0, %v169_v54  ;;  %v178_v56 = vsub.s32 2, %v169_v54  ;;  %v166_v57 = vld [vmem:[#allocation11] sm:$0x7]  ;;  %v174_v58 = vsub.s32 1, %v169_v54  ;;  %s702_s4 = smov [#allocation12]  }
  0x68   :  { %316 = vmatpush1.bf16.msra.mxu0 %v524_v18  ;;  %487 = vmatprep.subr.bf16.mxu1 %v699_v4  ;;  %s424_s6 = sshll.u32 %s702_s4, 4  ;;  %s425_s6 = int_to_ptr.vmem [resolvable:$true] %s424_s6 }
  0x69   :  { %317 = vmatprep.subr.bf16.mxu0 %v526_v20  ;;  %v171_v59 = vrot.slane %v166_v57, %v170_v55  ;;  %v179_v60 = vrot.slane %v166_v57, %v178_v56  ;;  %v175_v61 = vrot.slane %v166_v57, %v174_v58  ;;  %s660_s7 = scalar_lea.vmem %s425_s6, 384  ;;  %p665_p13 = scmp.lt.s32.totalorder %s425_s6, %s425_s6 }
  0x6a   :  { %p661_p12 = scmp.ne.s32.totalorder %s425_s6, %s660_s7  ;;  %p666_p0 = scmp.lt.s32.totalorder %s660_s7, %s660_s7 }
  0x6b   :  { %488 = vmatpush3.bf16.msra.mxu1 %v529_v22 }
  0x6c   :  { %318 = vmatpush1.bf16.msra.mxu0 %v528_v21  ;;  %489 = vmatprep.subr.bf16.mxu1 %v699_v4  ;;  %p667_p1 = por %p666_p0, %p665_p13 }
  0x6d   :  { %319 = vmatprep.subr.bf16.mxu0 %v530_v23 }
  0x6e   :  { %p668_p2 = pnand %p667_p1, %p661_p12 }
  0x6f   :  { %490 = vmatpush3.bf16.msra.mxu1 %v533_v25 }
  0x70   :  { %320 = vmatpush1.bf16.msra.mxu0 %v532_v24  ;;  %491 = vmatprep.subr.bf16.mxu1 %v699_v4 }
  0x71   :  { %321 = vmatprep.subr.bf16.mxu0 %v534_v26 }
  0x73   :  { %492 = vmatpush3.bf16.msra.mxu1 %v537_v28 }
  0x74   :  { %322 = vmatpush1.bf16.msra.mxu0 %v536_v27  ;;  %493 = vmatprep.subr.bf16.mxu1 %v699_v4 }
  0x75   :  { %323 = vmatprep.subr.bf16.mxu0 %v538_v29 }
  0x77   :  { %494 = vmatpush3.bf16.msra.mxu1 %v541_v32 }
  0x78   :  { %324 = vmatpush1.bf16.msra.mxu0 %v540_v31  ;;  %495 = vmatprep.subr.bf16.mxu1 %v699_v4 }
  0x79   :  { %325 = vmatprep.subr.bf16.mxu0 %v542_v33 }
  0x7b   :  { %496 = vmatpush3.bf16.msra.mxu1 %v545_v35 }
  0x7c   :  { %326 = vmatpush1.bf16.msra.mxu0 %v544_v34 }
  0xeb   :  { %v91_v7 = vpop.xlane.xlu0 %90 }
  0xec   :  { %v95_v8 = vmul.f32 0.0078125, %v91_v7 }
  0xee   :  { %v805_v9 = vsub.f32 %v88_v0, %v95_v8 }
  0xef   :  { %v93_v10 = vpop.xlane.xlu0 %92 }
  0xf0   :  { %v96_v11 = vmul.f32 0.0078125, %v93_v10  ;;  %v99_v12 = vmul.f32 %v805_v9, %v805_v9 }
  0xf2   :  { %v809_v13 = vsub.f32 %v89_v1, %v96_v11  ;;  %101 = vadd.xlane.f32.xlu1 %v99_v12 }
  0xf4   :  { %v100_v14 = vmul.f32 %v809_v13, %v809_v13 }
  0xf6   :  { %103 = vadd.xlane.f32.xlu1 %v100_v14 }
 0x17f   :  { %v102_v36 = vpop.xlane.xlu1 %101 }
 0x180   :  { %v105_v37 = vmul.f32 0.0078125, %v102_v36 }
 0x182   :  { %v107_v38 = vadd.f32 1e-05, %v105_v37 }
 0x183   :  { %v104_v39 = vpop.xlane.xlu1 %103 }
 0x184   :  { %546 = vrsqrt.f32 %v107_v38  ;;  %v106_v40 = vmul.f32 0.0078125, %v104_v39 }
 0x186   :  { %v108_v41 = vadd.f32 1e-05, %v106_v40 }
 0x188   :  { %548 = vrsqrt.f32 %v108_v41 }
 0x18e   :  { %v547_v42 = vpop.eup %546 }
 0x18f   :  { %v111_v43 = vmul.f32 %v547_v42, %v805_v9 }
 0x191   :  { %v120_v47 = vmul.f32 %v438_v44, %v111_v43 }
 0x192   :  { %v549_v45 = vpop.eup %548 }
 0x193   :  { %v112_v46 = vmul.f32 %v549_v45, %v809_v13  ;;  %v129_v50 = vadd.f32 %v439_v48, %v120_v47 }
 0x195   :  { %v121_v49 = vmul.f32 %v438_v44, %v112_v46 }
 0x197   :  { %v130_v51 = vadd.f32 %v439_v48, %v121_v49 }
 0x199   :  { %v131_v52 = vpack.c.bf16 %v130_v51, %v129_v50 }
 0x19b   :  { %344 = vmatmul.mubr.bf16.vlgmr.msra.gmra.mrb[0].mxu0 %v131_v52  ;;  %498 = vmatmul.mubr.bf16.vlgmr.msra.gmra.mrb[0].mxu1 %v131_v52 }
 0x26e   :  { %v345_v62 = vpop.f32.mrb[0].mxu0  ;;  %v388_v63 = vpop.f32.mrb[0].mxu1 }
 0x26f   :  { %v346_v0 = vadd.f32 %v345_v62, %v171_v59  ;;  %v389_v1 = vadd.f32 %v388_v63, %v179_v60  ;;  %v347_v2 = vpop.f32.mrb[1].mxu0  ;;  %v499_v3 = vpop.f32.mrb[1].mxu1 }
 0x270   :  { %v348_v4 = vadd.f32 %v347_v2, %v175_v61  ;;  %v349_v5 = vpop.f32.mrb[2].mxu0  ;;  %v391_v6 = vpop.f32.mrb[2].mxu1 }
 0x271   :  { %v469_v7 = vpack.c.bf16 %v389_v1, %v389_v1  ;;  %v350_v8 = vadd.f32 %v349_v5, %v171_v59  ;;  %v392_v9 = vadd.f32 %v391_v6, %v179_v60  ;;  %v351_v10 = vpop.f32.mrb[3].mxu0  ;;  %v500_v11 = vpop.f32.mrb[3].mxu1 }
 0x272   :  { %v468_v12 = vpack.c.bf16 %v348_v4, %v346_v0  ;;  %v352_v13 = vadd.f32 %v351_v10, %v175_v61 }
 0x273   :  { %416 = vst [vmem:[#allocation12 + $0x8] sm:$0xf] %v469_v7  ;;  %v471_v14 = vpack.c.bf16 %v392_v9, %v392_v9 }
 0x274   :  { %415 = vst [vmem:[#allocation12] sm:$0xff] %v468_v12  ;;  %v470_v15 = vpack.c.bf16 %v352_v13, %v350_v8 }
 0x275   :  { %418 = vst [vmem:[#allocation12 + $0x14] sm:$0xf] %v471_v14 }
 0x276   :  { %417 = vst [vmem:[#allocation12 + $0xc] sm:$0xff] %v470_v15 }
 0x277   :  { %671 = shalt.err (!%p668_p2)
}
 0x278   :  { %s672_s10 = scalar_lea.hbm %s842_s5, 384 }
 0x279   :  { %p673_p3 = scmp.ne.s32.totalorder %s842_s5, %s672_s10  ;;  %p676_p4 = scmp.lt.u32.totalorder %s672_s10, %s842_s5 }
 0x27b   :  { %p678_p5 = pnand %p676_p4, %p673_p3 }
 0x27d   :  { %681 = shalt.err (!%p678_p5)
}
 0x27e   :  { %430 = dma.vmem_to_hbm [thread:$0]  %s425_s6, 384, %s842_s5, [#allocation5], %s692_s1, %s692_s1, %s693_s16  }
 0x27f   :  { %688 = dma.done.wait [#allocation5], 384  }
 0x280   :  { %689 = vsyncadd [#allocation5], 4294966912 }
 0x281   :  { %434 = vsyncpa [#allocation4], 1 }
 0x282   :  { %435 = vsyncpa [#allocation7], 1 }
 0x283   :  { %436 = vsyncpa [#allocation10], 1 }
 0x284   :  { %437 = vsyncpa [#allocation5], 1 }

// kernel: transformer_encoder.12
= control target key start
LH: loop header
LB: loop body
LE: loop exit
PB: predicated region body
PF: predicated region fallthrough
CT: control target
= control target key end

     0   :  { %7 = vsyncpa [#allocation3], 0  ;;  %s1524_s0 = inlined_call_operand.hbm [shape: bf16[2,8,384], index: 0, kind: input, shape index: {}]   ;;  %s1525_s1 = inlined_call_operand.hbm [shape: f32[2,1,8], index: 1, kind: input, shape index: {}]   ;;  %s1526_s2 = inlined_call_operand.hbm [shape: bf16[2,8,128], index: 2, kind: output, shape index: {}]  }
   0x1   :  { %9 = vsyncpa [#allocation3 + $0x1], 0 }
   0x2   :  { %10 = vsyncpa [#allocation6], 0 }
   0x3   :  { %12 = vsyncpa [#allocation6 + $0x1], 0 }
   0x4   :  { %13 = vsyncpa [#allocation4], 0 }
   0x5   :  { %15 = vsyncpa [#allocation4 + $0x1], 0  ;;  %s1223_s9 = smov 0   ;;  %s1225_s10 = smov 0  }
   0x6   :  { %s1227_s11 = smov 0   ;;  %s1229_s12 = smov 0  }
   0x7   :  { %s1231_s13 = smov 0   ;;  %s1233_s14 = smov 0  }
   0x8 LB: > { %s852_s15 = sadd.s32 4294967295, %s1198_s14   ;;  %s853_s16 = sadd.s32 4294967294, %s1198_s14   ;;  %s1198_s14 = sphi %s1233_s14, %s21_s14   ;;  %s1194_s13 = sphi %s1231_s13, %s1545_s13   ;;  %s1190_s12 = sphi %s1229_s12, %s1544_s12   ;;  %s1186_s11 = sphi %s1227_s11, %s1543_s11   ;;  %s1182_s10 = sphi %s1225_s10, %s1542_s10   ;;  %s1178_s9 = sphi %s1223_s9, %s1541_s9  }
   0x9   : > { %s33_s17 = sadd.s32 1, %s1194_s13  ;;  %s40_s18 = sadd.s32 1, %s1186_s11 }
   0xa   : > { %p35_p0 = scmp.ge.s32.totalorder %s33_s17, 2  ;;  %p47_p1 = scmp.ne.s32.totalorder %s1186_s11, %s1182_s10 }
   0xb   : > { %p48_p2 = scmp.eq.s32.totalorder %s1198_s14, 0  ;;  %p53_p3 = scmp.ne.s32.totalorder %s1182_s10, %s1178_s9 }
   0xc   : > { %s1547_s17 = smov (%p35_p0, %s33_s17), 0  ;;  %p54_p5 = scmp.eq.s32.totalorder %s852_s15, 0 }
   0xd   : > { %p1264_p4 = por %p48_p2, %p47_p1  ;;  %s37_s20 = ssub.s32 %s1194_s13, %s1547_s17 }
   0xe   : > { %p105_p6 = scmp.eq.s32.totalorder %s852_s15, 1  ;;  %p38_p7 = scmp.eq.s32.totalorder %s37_s20, 0 }
   0xf   : > { %p1270_p8 = por %p54_p5, %p53_p3  ;;  %p111_p10 = scmp.eq.s32.totalorder %s853_s16, 1 }
  0x10   : > { %p1274_p9 = por %p105_p6, %p47_p1  ;;  %p972_p13 = scmp.lt.s32.totalorder %s1198_s14, 2 }
  0x11   : > { %s1530_s21 = scalar_select %p1270_p8, 1, 0 }
  0x12   : > { %s1531_s22 = scalar_select %p1274_p9, 1, 0 }
  0x13   : > { %s1279_s23 = scalar_select %p38_p7, %s1186_s11, %s40_s18  }
  0x14   : > { %p1281_p11 = por %p111_p10, %p53_p3  ;;  %s1288_s25 = sand.u32 1, %s1186_s11  }
  0x15   : > { %s952_s26 = smul.u32 12, %s1288_s25  ;;  %p1294_p0 = pnand %p972_p13, %p1264_p4 }
  0x16   : > { %s1532_s24 = scalar_select %p1281_p11, 1, 0 }
  0x17   : > { %s953_s27 = smul.u32 192, %s1194_s13  ;;  %s135_s4 = scalar_lea.vmem [#allocation2], %s952_s26 }
  0x18   : > { %s143_s5 = sshll.u32 %s135_s4, 4  ;;  %s132_s6 = scalar_lea.sflag [#allocation3], %s1288_s25  ;;  %s1304_s5 = int_to_ptr.vmem [resolvable:$true] %s143_s5 }
  0x19   : > { %s1302_s3 = scalar_lea.hbm %s1524_s0, %s953_s27  ;;  %p1054_p3 = pneg %p1294_p0 }
  0x1a   : > { %s1052_s7 = scalar_lea.hbm %s1302_s3, 192  ;;  %s1057_s16 = scalar_lea.hbm %s1524_s0, 384 }
  0x1b   : > { %p1053_p2 = scmp.ne.s32.totalorder %s1302_s3, %s1052_s7  ;;  %p1058_p6 = scmp.lt.u32.totalorder %s1302_s3, %s1524_s0 }
  0x1c   : > { %p1059_p7 = scmp.lt.u32.totalorder %s1057_s16, %s1052_s7  ;;  %p1061_p13 = scmp.lt.u32.totalorder %s1052_s7, %s1302_s3 }
  0x1d   : > { %p1055_p4 = pnand %p1054_p3, %p1053_p2 }
  0x1e   : > { %p1060_p10 = por %p1059_p7, %p1058_p6 }
  0x1f   : > { %p1056_p5 = pneg %p1055_p4 }
  0x20   : > { %p1062_p12 = por %p1061_p13, %p1060_p10 }
  0x22   : > { %p1063_p1 = pnand %p1062_p12, %p1056_p5 }
  0x24   : > { %1066 = shalt.err (!%p1063_p1)
}
  0x25   : > { %s1067_s20 = scalar_lea.vmem %s1304_s5, 192  ;;  %s1200_s26 = smov [#allocation2]  }
  0x26   : > { %p1068_p2 = scmp.ne.s32.totalorder %s1304_s5, %s1067_s20  ;;  %s1072_s27 = sshll.u32 %s1200_s26, 4  ;;  %s1073_s27 = int_to_ptr.vmem [resolvable:$false] %s1072_s27 }
  0x27   : > { %s1074_s29 = scalar_lea.vmem %s1073_s27, 384  ;;  %p1075_p9 = scmp.lt.s32.totalorder %s1304_s5, %s1073_s27 }
  0x28   : > { %p1070_p4 = pnand %p1068_p2, %p1054_p3  ;;  %p1076_p6 = scmp.lt.s32.totalorder %s1074_s29, %s1067_s20 }
  0x2a   : > { %p1071_p11 = pneg %p1070_p4  ;;  %p1077_p7 = por %p1076_p6, %p1075_p9 }
  0x2c   : > { %p1078_p10 = pnand %p1077_p7, %p1071_p11 }
  0x2e   : > { %1081 = shalt.err (!%p1078_p10)
}
  0x2f   : > { %964 = dma.hbm_to_vmem [thread:$0]  (!%p1294_p0), %s1302_s3, 192, %s1304_s5, %s132_s6  }
  0x30   : > { %p165_p12 = scmp.lt.s32.totalorder %s1198_s14, 3  ;;  %s857_s30 = sshll.u32 %s1194_s13, 4 }
  0x31   : > { %p1534_p1 = scmp.ge.s32.totalorder %s1198_s14, 1  ;;  %s1343_s15 = scalar_lea.hbm %s1525_s1, %s857_s30 }
  0x32   : > { %s153_s16 = scalar_lea.vmem [#allocation5], %s1288_s25  ;;  %s151_s3 = scalar_lea.sflag [#allocation6], %s1288_s25 }
  0x33   : > { %p1336_p5 = pnand %p1534_p1, %p165_p12  ;;  %s160_s18 = sshll.u32 %s153_s16, 4  ;;  %s161_s18 = int_to_ptr.vmem [resolvable:$true] %s160_s18 }
  0x34   : > { %s1082_s5 = scalar_lea.hbm %s1343_s15, 16  ;;  %s1087_s20 = scalar_lea.hbm %s1525_s1, 32 }
  0x35   : > { %s1535_s4 = scalar_select %p1336_p5, 1, 0 }
  0x36   : > { %p1083_p9 = scmp.ne.s32.totalorder %s1343_s15, %s1082_s5  ;;  %p1088_p2 = scmp.lt.u32.totalorder %s1343_s15, %s1525_s1 }
  0x37   : > { %p1089_p4 = scmp.lt.u32.totalorder %s1087_s20, %s1082_s5  ;;  %p1091_p7 = scmp.lt.u32.totalorder %s1082_s5, %s1343_s15 }
  0x38   : > { %p1085_p11 = pnand %p1083_p9, %p1054_p3 }
  0x39   : > { %p1090_p6 = por %p1089_p4, %p1088_p2 }
  0x3a   : > { %p1086_p13 = pneg %p1085_p11 }
  0x3b   : > { %p1092_p10 = por %p1091_p7, %p1090_p6 }
  0x3d   : > { %p1093_p12 = pnand %p1092_p10, %p1086_p13 }
  0x3f   : > { %1096 = shalt.err (!%p1093_p12)
}
  0x40   : > { %s1097_s25 = scalar_lea.vmem %s161_s18, 16  ;;  %s1201_s29 = smov [#allocation5]  }
  0x41   : > { %p1098_p1 = scmp.ne.s32.totalorder %s161_s18, %s1097_s25  ;;  %s1102_s30 = sshll.u32 %s1201_s29, 4  ;;  %s1103_s30 = int_to_ptr.vmem [resolvable:$false] %s1102_s30 }
  0x42   : > { %s1104_s7 = scalar_lea.vmem %s1103_s30, 32  ;;  %p1105_p8 = scmp.lt.s32.totalorder %s161_s18, %s1103_s30 }
  0x43   : > { %p1100_p9 = pnand %p1098_p1, %p1054_p3  ;;  %p1106_p5 = scmp.lt.s32.totalorder %s1104_s7, %s1097_s25 }
  0x45   : > { %p1101_p11 = pneg %p1100_p9  ;;  %p1107_p2 = por %p1106_p5, %p1105_p8 }
  0x47   : > { %p1108_p4 = pnand %p1107_p2, %p1101_p11 }
  0x49   : > { %1111 = shalt.err (!%p1108_p4)
}
  0x4a   : > { %967 = dma.hbm_to_vmem [thread:$0]  (!%p1294_p0), %s1343_s15, 16, %s161_s18, %s151_s3  }
  0x4b   : > { %p1536_p13 = scmp.ne.s32.totalorder %s1535_s4, 0 }
  0x4c   : > { %s1369_s8 = sand.u32 (!%p1536_p13), 1, %s1182_s10   ;;  %p1537_p8 = scmp.ne.s32.totalorder (!%p1536_p13), %s1530_s21, 0 }
  0x4d   : > { %169 = sbr.rel (%p1536_p13) target bundleno = 1565 (0x61d), region = 28  ;;  %s172_s5 = scalar_lea.sflag (!%p1536_p13), [#allocation3], %s1369_s8 }
  0x4e   : > { %s954_s16 = smul.u32 (!%p1536_p13), 12, %s1369_s8 }
  0x50   : > { %s1373_s6 = scalar_lea.vmem (!%p1536_p13), [#allocation2], %s954_s16 }
  0x54   : > { %1165 = dma.done.wait (%p1537_p8), %s172_s5, 192  }
  0x55   : > { %1167 = vsyncadd (%p1537_p8), %s172_s5, 4294967104  ;;  %s181_s28 = scalar_lea.sflag [#allocation6], %s1369_s8  ;;  %s183_s4 = scalar_lea.vmem [#allocation5], %s1369_s8 }
  0x56   : > { %1169 = dma.done.wait (%p1537_p8), %s181_s28, 16  }
  0x57   : > { %1171 = vsyncadd (%p1537_p8), %s181_s28, 4294967280  ;;  %v1202_v0 = vmov 0.0   ;;  %vm1203_vm0 = vmmov 0   ;;  %vm219_vm1 = vcmask 261120   ;;  %v217_v1 = vld [vmem:[%s1373_s6 + $0x4] sm:$0xf] }
  0x58   : > { %904 = vmatprep.subr.bf16.mxu0 %v1202_v0  ;;  %906 = vmatprep.mubr.msk.bf16.mxu0 %vm1203_vm0, %v1202_v0  ;;  %v224_v2 = vsel %vm219_vm1, %v217_v1, 0  ;;  %v216_v3 = vld [vmem:[%s1373_s6] sm:$0xf]  ;;  %vm274_vm2 = vcmask 64512   ;;  %v1027_v12 = vld [vmem:[%s1373_s6 + $0x4] ss:$0 sps:$4 sm:$0xff]  }
  0x59   : > { %910 = vmatprep.subr.bf16.mxu1 %v1202_v0  ;;  %912 = vmatprep.mubr.msk.bf16.mxu1 %vm1203_vm0, %v1202_v0  ;;  %v1398_v5 = vld [vmem:[%s183_s4] ss:$0 sm:$0xff]  ;;  %s1204_s21 = smov 96   ;;  %s1205_s15 = smov 64   ;;  %v1031_v15 = vld [vmem:[%s1373_s6 + $0x4] ss:$0 sps:$4 sm:$0xff]  }
  0x5a   : > { %905 = vmatpush3.bf16.xpose.msra.mxu0 %v224_v2  ;;  %348 = vrot.lane.b32.xlu1 %v1027_v12, %s1204_s21  ;;  %v1028_v13 = vld [vmem:[%s1373_s6] ss:$0 sps:$4 sm:$0xff]   ;;  %s1206_s18 = smov 32   ;;  %v218_v22 = vld [vmem:[%s1373_s6 + $0x8] sm:$0xf]  ;;  %vm290_vm3 = vcmask 1043456  }
  0x5b   : > { %922 = vmatprep.subr.bf16.mxu0 %v1202_v0  ;;  %v1030_v14 = vld [vmem:[%s1373_s6] ss:$0 sps:$4 sm:$0xff]   ;;  %v292_v23 = vsel %vm290_vm3, %v218_v22, 0  ;;  %v1029_v24 = vld [vmem:[%s1373_s6 + $0x4] ss:$0 sps:$4 sm:$0xff]   ;;  %s859_s3 = sshll.u32 %s1369_s8, 2 }
  0x5c   : > { %v1032_v16 = vld [vmem:[%s1373_s6] ss:$0 sps:$4 sm:$0xff]   ;;  %911 = vmatpush3.bf16.msra.mxu1 %v292_v23  ;;  %vm335_vm4 = vcmask 257024   ;;  %s1434_s19 = scalar_lea.vmem [#allocation7], %s859_s3  ;;  %v1034_v12 = vld [vmem:[%s1373_s6 + $0x8] ss:$0 sps:$4 sm:$0xff]  }
  0x5d   : > { %916 = vmatprep.subr.bf16.mxu1 %v1202_v0  ;;  %vm468_vm5 = vcmask 519424   ;;  %vm601_vm6 = vcmask 781824   ;;  %s882_s20 = sshll.u32 %s1190_s12, 6  ;;  %s751_s26 = sshll.u32 %s1434_s19, 4  ;;  %vm734_vm7 = vcmask 1044224   ;;  %s1476_s26 = int_to_ptr.vmem [resolvable:$true] %s751_s26 }
  0x5e   : > { %343 = vrot.lane.b32.xlu1 %v1028_v13, %s1204_s21  ;;  %s1474_s29 = scalar_lea.hbm %s1526_s2, %s882_s20  ;;  %s737_s30 = scalar_lea.sflag [#allocation4], %s1369_s8 }
  0x5f   : > { %s1112_s7 = scalar_lea.vmem %s1476_s26, 64  ;;  %p1538_p3 = scmp.ne.s32.totalorder %s1531_s22, 0 }
  0x60   : > { %p1113_p0 = scmp.ne.s32.totalorder %s1476_s26, %s1112_s7  ;;  %s1207_s12 = smov [#allocation7]  }
  0x61   : > { %907 = vmatmul.mubr.msk.bf16.vlgmr.msra.gmra.mrb[0].mxu0 %vm219_vm1, %v216_v3  ;;  %s1116_s16 = sshll.u32 %s1207_s12, 4  ;;  %s1117_s16 = int_to_ptr.vmem [resolvable:$false] %s1116_s16 }
  0x62   : > { %924 = vmatprep.mubr.msk.bf16.mxu0 %vm1203_vm0, %v1202_v0  ;;  %476 = vrot.lane.b32.xlu1 %v1030_v14, %s1205_s15  ;;  %p1114_p5 = pnand %p1113_p0, %p1538_p3  ;;  %s1118_s5 = scalar_lea.vmem %s1117_s16, 128 }
  0x63   : > { %p1119_p7 = scmp.lt.s32.totalorder %s1476_s26, %s1117_s16  ;;  %p1120_p10 = scmp.lt.s32.totalorder %s1118_s5, %s1112_s7 }
  0x64   : > { %p1115_p6 = pneg %p1114_p5 }
  0x65   : > { %p1121_p12 = por %p1120_p10, %p1119_p7 }
  0x66   : > { %614 = vrot.lane.b32.xlu1 %v1031_v15, %s1206_s18 }
  0x67   : > { %p1122_p1 = pnand %p1121_p12, %p1115_p6 }
  0x6a   : > { %609 = vrot.lane.b32.xlu1 %v1032_v16, %s1206_s18 }
  0xcc   : > { %v349_v27 = vpop.permute.xlu1 %348 }
  0xcd   : > { %v354_v29 = vsel %vm219_vm1, %v349_v27, 0 }
  0xd0   : > { %v344_v31 = vpop.permute.xlu1 %343 }
  0xd4   : > { %v477_v33 = vpop.permute.xlu1 %476 }
  0xd8   : > { %v615_v35 = vpop.permute.xlu1 %614 }
  0xd9   : > { %v620_v36 = vsel %vm219_vm1, %v615_v35, 0 }
  0xdc   : > { %v610_v37 = vpop.permute.xlu1 %609 }
 0x134   : > { %v260_v4 = vpop.f32.mrb[0].mxu0 }
 0x135   : > { %v266_v6 = vmul.f32 0.17677669, %v260_v4  ;;  %v908_v7 = vpop.f32.mrb[1].mxu0 }
 0x136   : > { %v263_v8 = vpop.f32.mrb[2].mxu0 }
 0x137   : > { %v909_v9 = vpop.f32.mrb[3].mxu0  ;;  %v273_v10 = vadd.f32 %v1398_v5, %v266_v6 }
 0x139   : > { %v275_v11 = vsel %vm274_vm2, %v273_v10, -inf }
 0x13a   : > { %276 = vmax.xlane.f32.xlu0 %v275_v11  ;;  %v1033_v11 = vld [vmem:[%s1373_s6 + $0x8] ss:$0 sps:$4 sm:$0xff]  }
 0x1c7   : > { %v277_v17 = vpop.xlane.xlu0 %276 }
 0x1c8   : > { %v278_v18 = vsub.f32 %v273_v10, %v277_v17 }
 0x1ca   : > { %v279_v19 = vmul.f32 1.442695, %v278_v18  ;;  %v1035_v18 = vld [vmem:[%s1373_s6 + $0x8] ss:$0 sps:$4 sm:$0xff]  }
 0x1cc   : > { %1036 = vpow2.f32 %v279_v19 }
 0x1d6   : > { %v1037_v20 = vpop.eup %1036 }
 0x1d7   : > { %v281_v21 = vsel %vm274_vm2, %v1037_v20, 0.0 }
 0x1d8   : > { %282 = vadd.xlane.f32.xlu0 %v281_v21 }
 0x1ee   : > { %481 = vrot.lane.b32.xlu0 %v1029_v24, %s1205_s15 }
 0x265   : > { %v283_v25 = vpop.xlane.xlu0 %282 }
 0x266   : > { %1038 = vrcp.f32 %v283_v25 }
 0x269   : > { %v482_v32 = vpop.permute.xlu0 %481 }
 0x26a   : > { %v487_v34 = vsel %vm219_vm1, %v482_v32, 0 }
 0x270   : > { %v1039_v26 = vpop.eup %1038 }
 0x271   : > { %v285_v28 = vmul.f32 %v1039_v26, %v1037_v20 }
 0x273   : > { %v286_v30 = vpack.c.bf16 %v285_v28, %v285_v28 }
 0x275   : > { %913 = vmatmul.mubr.msk.bf16.vlgmr.msra.gmra.mrb[0].mxu1 %vm274_vm2, %v286_v30 }
 0x276   : > { %917 = vmatpush3.bf16.xpose.msra.mxu1 %v354_v29  ;;  %918 = vmatprep.mubr.msk.bf16.mxu1 %vm1203_vm0, %v1202_v0 }
 0x277   : > { %928 = vmatprep.subr.bf16.mxu1 %v1202_v0 }
 0x27d   : > { %919 = vmatmul.mubr.msk.bf16.vlgmr.msra.gmra.mrb[4].mxu1 %vm219_vm1, %v344_v31 }
 0x27e   : > { %929 = vmatpush3.bf16.xpose.msra.mxu1 %v487_v34  ;;  %930 = vmatprep.mubr.msk.bf16.mxu1 %vm1203_vm0, %v1202_v0 }
 0x27f   : > { %940 = vmatprep.subr.bf16.mxu1 %v1202_v0 }
 0x285   : > { %931 = vmatmul.mubr.msk.bf16.vlgmr.msra.gmra.mrb[8].mxu1 %vm219_vm1, %v477_v33 }
 0x286   : > { %941 = vmatpush3.bf16.xpose.msra.mxu1 %v620_v36  ;;  %942 = vmatprep.mubr.msk.bf16.mxu1 %vm1203_vm0, %v1202_v0 }
 0x28d   : > { %943 = vmatmul.mubr.msk.bf16.vlgmr.msra.gmra.mrb[12].mxu1 %vm219_vm1, %v610_v37 }
 0x348   : > { %v328_v38 = vpop.f32.mrb[0].mxu1 }
 0x349   : > { %v334_v39 = vpack.c.bf16 %v328_v38, %v328_v38  ;;  %v914_v40 = vpop.f32.mrb[1].mxu1 }
 0x34a   : > { %v331_v41 = vpop.f32.mrb[2].mxu1 }
 0x34b   : > { %336 = vst.msk [vmem:[%s1434_s19] sm:$0xf] %vm335_vm4, %v334_v39  ;;  %v915_v42 = vpop.f32.mrb[3].mxu1 }
 0x350   : > { %v390_v43 = vpop.f32.mrb[4].mxu1 }
 0x351   : > { %v396_v44 = vmul.f32 0.17677669, %v390_v43  ;;  %v920_v45 = vpop.f32.mrb[5].mxu1 }
 0x352   : > { %v393_v46 = vpop.f32.mrb[6].mxu1 }
 0x353   : > { %v921_v47 = vpop.f32.mrb[7].mxu1  ;;  %v397_v48 = vadd.f32 %v1398_v5, %v396_v44 }
 0x355   : > { %v398_v49 = vsel %vm274_vm2, %v397_v48, -inf }
 0x356   : > { %399 = vmax.xlane.f32.xlu1 %v398_v49 }
 0x358   : > { %v523_v50 = vpop.f32.mrb[8].mxu1 }
 0x359   : > { %v529_v51 = vmul.f32 0.17677669, %v523_v50  ;;  %v932_v52 = vpop.f32.mrb[9].mxu1 }
 0x35a   : > { %v526_v53 = vpop.f32.mrb[10].mxu1 }
 0x35b   : > { %v530_v54 = vadd.f32 %v1398_v5, %v529_v51  ;;  %v933_v55 = vpop.f32.mrb[11].mxu1 }
 0x35d   : > { %v531_v56 = vsel %vm274_vm2, %v530_v54, -inf }
 0x35e   : > { %532 = vmax.xlane.f32.xlu0 %v531_v56 }
 0x360   : > { %v656_v57 = vpop.f32.mrb[12].mxu1 }
 0x361   : > { %v662_v58 = vmul.f32 0.17677669, %v656_v57  ;;  %v944_v59 = vpop.f32.mrb[13].mxu1 }
 0x362   : > { %v659_v60 = vpop.f32.mrb[14].mxu1 }
 0x363   : > { %v663_v61 = vadd.f32 %v1398_v5, %v662_v58  ;;  %v945_v62 = vpop.f32.mrb[15].mxu1 }
 0x365   : > { %v664_v63 = vsel %vm274_vm2, %v663_v61, -inf }
 0x366   : > { %665 = vmax.xlane.f32.xlu1 %v664_v63 }
 0x3e3   : > { %v400_v1 = vpop.xlane.xlu1 %399 }
 0x3e4   : > { %v401_v2 = vsub.f32 %v397_v48, %v400_v1 }
 0x3e6   : > { %v402_v3 = vmul.f32 1.442695, %v401_v2 }
 0x3e8   : > { %1040 = vpow2.f32 %v402_v3 }
 0x3eb   : > { %v533_v4 = vpop.xlane.xlu0 %532 }
 0x3ec   : > { %v534_v6 = vsub.f32 %v530_v54, %v533_v4 }
 0x3ee   : > { %v535_v7 = vmul.f32 1.442695, %v534_v6 }
 0x3f0   : > { %1042 = vpow2.f32 %v535_v7 }
 0x3f2   : > { %v1041_v8 = vpop.eup %1040 }
 0x3f3   : > { %v404_v9 = vsel %vm274_vm2, %v1041_v8, 0.0  ;;  %v666_v13 = vpop.xlane.xlu1 %665 }
 0x3f4   : > { %405 = vadd.xlane.f32.xlu1 %v404_v9  ;;  %v667_v14 = vsub.f32 %v663_v61, %v666_v13 }
 0x3f6   : > { %v668_v15 = vmul.f32 1.442695, %v667_v14 }
 0x3f8   : > { %1044 = vpow2.f32 %v668_v15 }
 0x3fa   : > { %v1043_v5 = vpop.eup %1042 }
 0x3fb   : > { %v537_v10 = vsel %vm274_vm2, %v1043_v5, 0.0 }
 0x3fc   : > { %538 = vadd.xlane.f32.xlu0 %v537_v10 }
 0x402   : > { %v1045_v16 = vpop.eup %1044 }
 0x403   : > { %v670_v17 = vsel %vm274_vm2, %v1045_v16, 0.0 }
 0x405   : > { %546 = vrot.lane.b32.xlu1 %v1033_v11, %s1205_s15 }
 0x412   : > { %413 = vrot.lane.b32.xlu0 %v1034_v12, %s1204_s21 }
 0x429   : > { %671 = vadd.xlane.f32.xlu1 %v670_v17 }
 0x43a   : > { %679 = vrot.lane.b32.xlu1 %v1035_v18, %s1206_s18 }
 0x481   : > { %v406_v19 = vpop.xlane.xlu1 %405 }
 0x482   : > { %1046 = vrcp.f32 %v406_v19 }
 0x485   : > { %v547_v25 = vpop.permute.xlu1 %546 }
 0x486   : > { %v552_v27 = vsel %vm290_vm3, %v547_v25, 0 }
 0x489   : > { %v539_v20 = vpop.xlane.xlu0 %538 }
 0x48a   : > { %1048 = vrcp.f32 %v539_v20 }
 0x48c   : > { %v1047_v21 = vpop.eup %1046 }
 0x48d   : > { %v408_v22 = vmul.f32 %v1047_v21, %v1041_v8  ;;  %v414_v23 = vpop.permute.xlu0 %413 }
 0x48e   : > { %v419_v24 = vsel %vm290_vm3, %v414_v23, 0 }
 0x48f   : > { %923 = vmatpush3.bf16.msra.mxu0 %v419_v24  ;;  %v409_v26 = vpack.c.bf16 %v408_v22, %v408_v22 }
 0x490   : > { %934 = vmatprep.subr.bf16.mxu0 %v1202_v0 }
 0x492   : > { %925 = vmatmul.mubr.msk.bf16.vlgmr.msra.gmra.mrb[4].mxu0 %vm274_vm2, %v409_v26 }
 0x493   : > { %935 = vmatpush3.bf16.msra.mxu0 %v552_v27  ;;  %936 = vmatprep.mubr.msk.bf16.mxu0 %vm1203_vm0, %v1202_v0 }
 0x494   : > { %v1049_v28 = vpop.eup %1048  ;;  %946 = vmatprep.subr.bf16.mxu0 %v1202_v0 }
 0x495   : > { %v541_v29 = vmul.f32 %v1049_v28, %v1043_v5 }
 0x497   : > { %v542_v30 = vpack.c.bf16 %v541_v29, %v541_v29 }
 0x49a   : > { %937 = vmatmul.mubr.msk.bf16.vlgmr.msra.gmra.mrb[8].mxu0 %vm274_vm2, %v542_v30 }
 0x49b   : > { %948 = vmatprep.mubr.msk.bf16.mxu0 %vm1203_vm0, %v1202_v0 }
 0x4b6   : > { %v672_v31 = vpop.xlane.xlu1 %671 }
 0x4b7   : > { %1050 = vrcp.f32 %v672_v31 }
 0x4ba   : > { %v680_v32 = vpop.permute.xlu1 %679 }
 0x4bb   : > { %v685_v33 = vsel %vm290_vm3, %v680_v32, 0 }
 0x4bc   : > { %947 = vmatpush3.bf16.msra.mxu0 %v685_v33 }
 0x4c1   : > { %v1051_v34 = vpop.eup %1050 }
 0x4c2   : > { %v674_v35 = vmul.f32 %v1051_v34, %v1045_v16 }
 0x4c4   : > { %v675_v36 = vpack.c.bf16 %v674_v35, %v674_v35 }
 0x4c6   : > { %949 = vmatmul.mubr.msk.bf16.vlgmr.msra.gmra.mrb[12].mxu0 %vm274_vm2, %v675_v36 }
 0x565   : > { %v455_v37 = vpop.f32.mrb[4].mxu0 }
 0x566   : > { %v885_v38 = vpack.c.bf16 %v455_v37, %v455_v37  ;;  %v926_v39 = vpop.f32.mrb[5].mxu0 }
 0x567   : > { %v458_v40 = vpop.f32.mrb[6].mxu0 }
 0x568   : > { %465 = vrot.lane.b32.xlu0 %v885_v38, %s1206_s18  ;;  %v927_v41 = vpop.f32.mrb[7].mxu0 }
 0x56d   : > { %v588_v0 = vpop.f32.mrb[8].mxu0 }
 0x56e   : > { %v886_v42 = vpack.c.bf16 %v588_v0, %v588_v0  ;;  %v938_v43 = vpop.f32.mrb[9].mxu0 }
 0x56f   : > { %v591_v44 = vpop.f32.mrb[10].mxu0 }
 0x570   : > { %598 = vrot.lane.b32.xlu1 %v886_v42, %s1205_s15  ;;  %v939_v45 = vpop.f32.mrb[11].mxu0 }
 0x599   : > { %v721_v46 = vpop.f32.mrb[12].mxu0 }
 0x59a   : > { %v887_v47 = vpack.c.bf16 %v721_v46, %v721_v46  ;;  %v950_v48 = vpop.f32.mrb[13].mxu0 }
 0x59b   : > { %v724_v49 = vpop.f32.mrb[14].mxu0 }
 0x59c   : > { %731 = vrot.lane.b32.xlu0 %v887_v47, %s1204_s21  ;;  %v951_v50 = vpop.f32.mrb[15].mxu0 }
 0x5da   : > { %v466_v51 = vpop.permute.xlu0 %465 }
 0x5db   : > { %469 = vst.msk [vmem:[%s1434_s19] sm:$0xf] %vm468_vm5, %v466_v51 }
 0x5e2   : > { %v599_v52 = vpop.permute.xlu1 %598 }
 0x5e3   : > { %602 = vst.msk [vmem:[%s1434_s19] sm:$0xf] %vm601_vm6, %v599_v52 }
 0x60e   : > { %v732_v53 = vpop.permute.xlu0 %731 }
 0x60f   : > { %735 = vst.msk [vmem:[%s1434_s19] sm:$0xf] %vm734_vm7, %v732_v53 }
 0x610   : > { %1125 = shalt.err (!%p1122_p1)
}
 0x611   : > { %s1126_s8 = scalar_lea.hbm %s1474_s29, 64  ;;  %s1130_s4 = scalar_lea.hbm %s1526_s2, 128 }
 0x612   : > { %p1127_p9 = scmp.ne.s32.totalorder %s1474_s29, %s1126_s8  ;;  %p1131_p4 = scmp.lt.u32.totalorder %s1474_s29, %s1526_s2 }
 0x613   : > { %p1132_p13 = scmp.lt.u32.totalorder %s1130_s4, %s1126_s8  ;;  %p1134_p0 = scmp.lt.u32.totalorder %s1126_s8, %s1474_s29 }
 0x614   : > { %p1128_p11 = pnand %p1127_p9, %p1538_p3 }
 0x615   : > { %p1133_p8 = por %p1132_p13, %p1131_p4 }
 0x616   : > { %p1129_p2 = pneg %p1128_p11 }
 0x617   : > { %p1135_p5 = por %p1134_p0, %p1133_p8 }
 0x619   : > { %p1136_p6 = pnand %p1135_p5, %p1129_p2 }
 0x61b   : > { %1139 = shalt.err (!%p1136_p6)
}
 0x61c   : > { %959 = dma.vmem_to_hbm [thread:$0]  (%p1538_p3), %s1476_s26, 64, %s1474_s29, %s737_s30  }
 0x61d PF: > { %s763_s18 = sand.u32 1, %s1178_s9   ;;  %p1539_p7 = scmp.ne.s32.totalorder %s1532_s24, 0 }
 0x61e   : > { %p1540_p10 = scmp.ge.s32.totalorder %s1198_s14, 2  ;;  %s764_s3 = scalar_lea.sflag [#allocation4], %s763_s18 }
 0x620   : > { %p969_p12 = pnand %p1540_p10, %p1539_p7 }
 0x622   : > { %1173 = dma.done.wait (!%p969_p12), %s764_s3, 64  }
 0x623   : > { %1175 = vsyncadd (!%p969_p12), %s764_s3, 4294967232  ;;  %s21_s14 = sadd.s32 1, %s1198_s14   ;;  %s1541_s9 = smov %s1182_s10 }
 0x624   : > { %p18_p1 = scmp.ge.s32.totalorder %s21_s14, 4   ;;  %s1542_s10 = smov %s1186_s11 }
 0x625   : > { %s1543_s11 = smov %s1279_s23  ;;  %s1544_s12 = smov %s1194_s13 }
 0x626   : > { %s1545_s13 = smov %s1547_s17  ;;  %20 = sbr.rel (!%p18_p1) target bundleno = 8 (0x8), region = 87 }
 0x62d   :  { %769 = vsyncpa [#allocation3], 1 }
 0x62e   :  { %771 = vsyncpa [#allocation3 + $0x1], 1 }
 0x62f   :  { %772 = vsyncpa [#allocation6], 1 }
 0x630   :  { %774 = vsyncpa [#allocation6 + $0x1], 1 }
 0x631   :  { %775 = vsyncpa [#allocation4], 1 }
 0x632   :  { %777 = vsyncpa [#allocation4 + $0x1], 1 }

// kernel: transformer_encoder.14
= control target key start
LH: loop header
LB: loop body
LE: loop exit
PB: predicated region body
PF: predicated region fallthrough
CT: control target
= control target key end

     0   :  { %10 = vsyncpa [#allocation4], 0  ;;  %s641_s0 = inlined_call_operand.hbm [shape: f32[16,128], index: 0, kind: input, shape index: {}]   ;;  %s642_s1 = inlined_call_operand.hbm [shape: f32[1,128], index: 1, kind: input, shape index: {}]   ;;  %s643_s2 = inlined_call_operand.hbm [shape: f32[1,128], index: 2, kind: input, shape index: {}]   ;;  %s644_s3 = inlined_call_operand.hbm [shape: bf16[128,256], index: 3, kind: input, shape index: {}]   ;;  %s645_s4 = inlined_call_operand.hbm [shape: f32[1,256], index: 4, kind: input, shape index: {}]   ;;  %s646_s5 = inlined_call_operand.hbm [shape: bf16[16,256], index: 5, kind: output, shape index: {}]  }
   0x1   :  { %11 = vsyncpa [#allocation7], 0 }
   0x2   :  { %12 = vsyncpa [#allocation10], 0 }
   0x3   :  { %13 = vsyncpa [#allocation5], 0  ;;  %s521_s18 = smov [#allocation6]   ;;  %s381_s22 = scalar_lea.hbm %s642_s1, 16 }
   0x4   :  { %s32_s19 = sshll.u32 %s521_s18, 4  ;;  %p382_p0 = scmp.ne.s32.totalorder %s642_s1, %s381_s22  ;;  %s33_s19 = int_to_ptr.vmem [resolvable:$true] %s32_s19 }
   0x5   :  { %p385_p1 = scmp.lt.u32.totalorder %s381_s22, %s642_s1 }
   0x7   :  { %p387_p2 = pnand %p385_p1, %p382_p0 }
   0x9   :  { %390 = shalt.err (!%p387_p2)
}
   0xa   :  { %s391_s27 = scalar_lea.vmem %s33_s19, 16  ;;  %s395_s28 = scalar_lea.vmem %s33_s19, 32 }
   0xb   :  { %p392_p3 = scmp.ne.s32.totalorder %s33_s19, %s391_s27  ;;  %p396_p4 = scmp.lt.s32.totalorder %s33_s19, %s33_s19 }
   0xc   :  { %p397_p5 = scmp.lt.s32.totalorder %s395_s28, %s391_s27 }
   0xe   :  { %p398_p6 = por %p397_p5, %p396_p4 }
  0x10   :  { %p399_p7 = pnand %p398_p6, %p392_p3 }
  0x12   :  { %402 = shalt.err (!%p399_p7)
}
  0x13   :  { %35 = dma.hbm_to_vmem [thread:$0]  %s642_s1, 16, %s33_s19, [#allocation7]  }
  0x14   :  { %s522_s6 = smov [#allocation9]   ;;  %s523_s8 = smov [#allocation3]  }
  0x15   :  { %s51_s7 = sshll.u32 %s522_s6, 4  ;;  %s19_s9 = sshll.u32 %s523_s8, 4  ;;  %s52_s7 = int_to_ptr.vmem [resolvable:$true] %s51_s7  ;;  %s20_s9 = int_to_ptr.vmem [resolvable:$true] %s19_s9 }
  0x16   :  { %s403_s12 = scalar_lea.hbm %s644_s3, 2048 }
  0x17   :  { %p404_p8 = scmp.ne.s32.totalorder %s644_s3, %s403_s12  ;;  %p407_p9 = scmp.lt.u32.totalorder %s403_s12, %s644_s3 }
  0x19   :  { %p409_p10 = pnand %p407_p9, %p404_p8 }
  0x1b   :  { %412 = shalt.err (!%p409_p10)
}
  0x1c   :  { %s413_s1 = scalar_lea.vmem %s52_s7, 2048  ;;  %p418_p12 = scmp.lt.s32.totalorder %s52_s7, %s52_s7 }
  0x1d   :  { %p414_p11 = scmp.ne.s32.totalorder %s52_s7, %s413_s1  ;;  %p419_p13 = scmp.lt.s32.totalorder %s413_s1, %s413_s1 }
  0x1f   :  { %p420_p0 = por %p419_p13, %p418_p12 }
  0x21   :  { %p421_p1 = pnand %p420_p0, %p414_p11 }
  0x23   :  { %424 = shalt.err (!%p421_p1)
}
  0x24   :  { %s524_s17 = smov 128   ;;  %s525_s18 = smov 8  }
  0x25   :  { %57 = dma.hbm_to_vmem [thread:$0]  %s644_s3, 2048, %s52_s7, [#allocation10], %s524_s17, %s524_s17, %s525_s18  }
  0x26   :  { %s425_s23 = scalar_lea.hbm %s641_s0, 256 }
  0x27   :  { %p426_p2 = scmp.ne.s32.totalorder %s641_s0, %s425_s23  ;;  %p429_p3 = scmp.lt.u32.totalorder %s425_s23, %s641_s0 }
  0x29   :  { %p431_p4 = pnand %p429_p3, %p426_p2 }
  0x2b   :  { %434 = shalt.err (!%p431_p4)
}
  0x2c   :  { %s435_s28 = scalar_lea.vmem %s20_s9, 256  ;;  %p440_p6 = scmp.lt.s32.totalorder %s20_s9, %s20_s9 }
  0x2d   :  { %p436_p5 = scmp.ne.s32.totalorder %s20_s9, %s435_s28  ;;  %p441_p7 = scmp.lt.s32.totalorder %s435_s28, %s435_s28 }
  0x2f   :  { %p442_p8 = por %p441_p7, %p440_p6 }
  0x31   :  { %p443_p9 = pnand %p442_p8, %p436_p5 }
  0x33   :  { %446 = shalt.err (!%p443_p9)
}
  0x34   :  { %25 = dma.hbm_to_vmem [thread:$0]  %s641_s0, 256, %s20_s9, [#allocation4], %s524_s17, %s524_s17, %s525_s18  }
  0x35   :  { %s526_s30 = smov [#allocation8]   ;;  %s527_s7 = smov [#allocation11]  }
  0x36   :  { %s42_s6 = sshll.u32 %s526_s30, 4  ;;  %s64_s8 = sshll.u32 %s527_s7, 4  ;;  %s43_s6 = int_to_ptr.vmem [resolvable:$true] %s42_s6  ;;  %s65_s8 = int_to_ptr.vmem [resolvable:$true] %s64_s8 }
  0x37   :  { %s447_s12 = scalar_lea.hbm %s643_s2, 16 }
  0x38   :  { %p448_p10 = scmp.ne.s32.totalorder %s643_s2, %s447_s12  ;;  %p451_p11 = scmp.lt.u32.totalorder %s447_s12, %s643_s2 }
  0x3a   :  { %p453_p12 = pnand %p451_p11, %p448_p10 }
  0x3c   :  { %456 = shalt.err (!%p453_p12)
}
  0x3d   :  { %s457_s0 = scalar_lea.vmem %s43_s6, 16  ;;  %s461_s9 = scalar_lea.vmem %s43_s6, 32 }
  0x3e   :  { %p458_p13 = scmp.ne.s32.totalorder %s43_s6, %s457_s0  ;;  %p462_p0 = scmp.lt.s32.totalorder %s43_s6, %s43_s6 }
  0x3f   :  { %p463_p1 = scmp.lt.s32.totalorder %s461_s9, %s457_s0 }
  0x41   :  { %p464_p2 = por %p463_p1, %p462_p0 }
  0x43   :  { %p465_p3 = pnand %p464_p2, %p458_p13 }
  0x45   :  { %468 = shalt.err (!%p465_p3)
}
  0x46   :  { %45 = dma.hbm_to_vmem [thread:$0]  %s643_s2, 16, %s43_s6, [#allocation7]  }
  0x47   :  { %s469_s22 = scalar_lea.hbm %s645_s4, 32 }
  0x48   :  { %p470_p4 = scmp.ne.s32.totalorder %s645_s4, %s469_s22  ;;  %p473_p5 = scmp.lt.u32.totalorder %s469_s22, %s645_s4 }
  0x4a   :  { %p475_p6 = pnand %p473_p5, %p470_p4 }
  0x4c   :  { %478 = shalt.err (!%p475_p6)
}
  0x4d   :  { %s479_s27 = scalar_lea.vmem %s65_s8, 32  ;;  %p484_p8 = scmp.lt.s32.totalorder %s65_s8, %s65_s8 }
  0x4e   :  { %p480_p7 = scmp.ne.s32.totalorder %s65_s8, %s479_s27  ;;  %p485_p9 = scmp.lt.s32.totalorder %s479_s27, %s479_s27 }
  0x50   :  { %p486_p10 = por %p485_p9, %p484_p8 }
  0x52   :  { %p487_p11 = pnand %p486_p10, %p480_p7 }
  0x54   :  { %490 = shalt.err (!%p487_p11)
}
  0x55   :  { %67 = dma.hbm_to_vmem [thread:$0]  %s645_s4, 32, %s65_s8, [#allocation10]  }
  0x56   :  { %513 = dma.done.wait [#allocation4], 256  }
  0x57   :  { %514 = vsyncadd [#allocation4], 4294967040 }
  0x58   :  { %515 = dma.done.wait [#allocation7], 32  }
  0x59   :  { %516 = vsyncadd [#allocation7], 4294967264 }
  0x5a   :  { %517 = dma.done.wait [#allocation10], 2080  }
  0x5b   :  { %518 = vsyncadd [#allocation10], 4294965216  ;;  %v88_v0 = vld [vmem:[#allocation3] sm:$0xff]  ;;  %v89_v1 = vld [vmem:[#allocation3 + $0x8] sm:$0xff]  ;;  %v528_v21 = vmov 0   ;;  %v152_v44 = vlaneseq  ;;  %s529_s4 = smov [#allocation12]  }
  0x5c   :  { %90 = vadd.xlane.f32.xlu0 %v88_v0  ;;  %v353_v2 = vld [vmem:[#allocation9 + $0x4] ss:$8 sps:$4 sm:$0xff]   ;;  %v355_v3 = vld [vmem:[#allocation9] ss:$8 sps:$4 sm:$0xff]   ;;  %v356_v4 = vld [vmem:[#allocation9 + $0x14] ss:$8 sps:$4 sm:$0xff]   ;;  %274 = vmatprep.mubr.bf16.mxu0 %v528_v21 }
  0x5d   :  { %242 = vmatprep.subr.bf16.mxu0 %v353_v2  ;;  %v358_v13 = vld [vmem:[#allocation9 + $0x10] ss:$8 sps:$4 sm:$0xff]   ;;  %v359_v14 = vld [vmem:[#allocation9 + $0x24] ss:$8 sps:$4 sm:$0xff]   ;;  %v361_v15 = vld [vmem:[#allocation9 + $0x20] ss:$8 sps:$4 sm:$0xff]  }
  0x5e   :  { %243 = vmatpush1.bf16.msra.mxu0 %v355_v3  ;;  %v362_v16 = vld [vmem:[#allocation9 + $0x34] ss:$8 sps:$4 sm:$0xff]   ;;  %v364_v17 = vld [vmem:[#allocation9 + $0x30] ss:$8 sps:$4 sm:$0xff]   ;;  %v365_v18 = vld [vmem:[#allocation9 + $0x44] ss:$8 sps:$4 sm:$0xff]  }
  0x5f   :  { %244 = vmatprep.subr.bf16.mxu0 %v356_v4  ;;  %v367_v19 = vld [vmem:[#allocation9 + $0x40] ss:$8 sps:$4 sm:$0xff]   ;;  %v368_v20 = vld [vmem:[#allocation9 + $0x54] ss:$8 sps:$4 sm:$0xff]   ;;  %v370_v22 = vld [vmem:[#allocation9 + $0x50] ss:$8 sps:$4 sm:$0xff]  }
  0x60   :  { %92 = vadd.xlane.f32.xlu0 %v89_v1  ;;  %v371_v23 = vld [vmem:[#allocation9 + $0x64] ss:$8 sps:$4 sm:$0xff]   ;;  %v373_v24 = vld [vmem:[#allocation9 + $0x60] ss:$8 sps:$4 sm:$0xff]   ;;  %v374_v25 = vld [vmem:[#allocation9 + $0x74] ss:$8 sps:$4 sm:$0xff]  }
  0x61   :  { %v376_v26 = vld [vmem:[#allocation9 + $0x70] ss:$8 sps:$4 sm:$0xff]   ;;  %v322_v35 = vld [vmem:[#allocation6] ss:$0 sm:$0xff]  ;;  %v323_v39 = vld [vmem:[#allocation8] ss:$0 sm:$0xff] }
  0x62   :  { %245 = vmatpush1.bf16.msra.mxu0 %v358_v13  ;;  %v153_v45 = vshrl.u32 %v152_v44, 7  ;;  %v150_v47 = vld [vmem:[#allocation11] sm:$0x3]  ;;  %s308_s3 = sshll.u32 %s529_s4, 4  ;;  %s309_s3 = int_to_ptr.vmem [resolvable:$true] %s308_s3 }
  0x63   :  { %246 = vmatprep.subr.bf16.mxu0 %v359_v14  ;;  %s491_s29 = scalar_lea.vmem %s309_s3, 256  ;;  %p496_p13 = scmp.lt.s32.totalorder %s309_s3, %s309_s3 }
  0x64   :  { %v154_v46 = vsub.s32 0, %v153_v45  ;;  %v158_v48 = vsub.s32 1, %v153_v45  ;;  %p492_p12 = scmp.ne.s32.totalorder %s309_s3, %s491_s29  ;;  %p497_p0 = scmp.lt.s32.totalorder %s491_s29, %s491_s29 }
  0x66   :  { %247 = vmatpush1.bf16.msra.mxu0 %v361_v15  ;;  %v155_v49 = vrot.slane %v150_v47, %v154_v46  ;;  %v159_v50 = vrot.slane %v150_v47, %v158_v48  ;;  %p498_p1 = por %p497_p0, %p496_p13 }
  0x67   :  { %248 = vmatprep.subr.bf16.mxu0 %v362_v16 }
  0x68   :  { %p499_p2 = pnand %p498_p1, %p492_p12 }
  0x6a   :  { %249 = vmatpush1.bf16.msra.mxu0 %v364_v17 }
  0x6b   :  { %250 = vmatprep.subr.bf16.mxu0 %v365_v18 }
  0x6e   :  { %251 = vmatpush1.bf16.msra.mxu0 %v367_v19 }
  0x6f   :  { %252 = vmatprep.subr.bf16.mxu0 %v368_v20 }
  0x72   :  { %253 = vmatpush1.bf16.msra.mxu0 %v370_v22 }
  0x73   :  { %254 = vmatprep.subr.bf16.mxu0 %v371_v23 }
  0x76   :  { %255 = vmatpush1.bf16.msra.mxu0 %v373_v24 }
  0x77   :  { %256 = vmatprep.subr.bf16.mxu0 %v374_v25 }
  0x7a   :  { %257 = vmatpush1.bf16.msra.mxu0 %v376_v26 }
  0xe9   :  { %v91_v5 = vpop.xlane.xlu0 %90 }
  0xea   :  { %v95_v6 = vmul.f32 0.0078125, %v91_v5 }
  0xec   :  { %v97_v7 = vsub.f32 %v88_v0, %v95_v6 }
  0xed   :  { %v93_v8 = vpop.xlane.xlu0 %92 }
  0xee   :  { %v96_v9 = vmul.f32 0.0078125, %v93_v8  ;;  %v99_v10 = vmul.f32 %v97_v7, %v97_v7 }
  0xf0   :  { %v98_v11 = vsub.f32 %v89_v1, %v96_v9  ;;  %101 = vadd.xlane.f32.xlu1 %v99_v10 }
  0xf2   :  { %v100_v12 = vmul.f32 %v98_v11, %v98_v11 }
  0xf4   :  { %103 = vadd.xlane.f32.xlu1 %v100_v12 }
 0x17d   :  { %v102_v27 = vpop.xlane.xlu1 %101 }
 0x17e   :  { %v105_v28 = vmul.f32 0.0078125, %v102_v27 }
 0x180   :  { %v107_v29 = vadd.f32 1e-05, %v105_v28 }
 0x181   :  { %v104_v30 = vpop.xlane.xlu1 %103 }
 0x182   :  { %377 = vrsqrt.f32 %v107_v29  ;;  %v106_v31 = vmul.f32 0.0078125, %v104_v30 }
 0x184   :  { %v108_v32 = vadd.f32 1e-05, %v106_v31 }
 0x186   :  { %379 = vrsqrt.f32 %v108_v32 }
 0x18c   :  { %v378_v33 = vpop.eup %377 }
 0x18d   :  { %v111_v34 = vmul.f32 %v378_v33, %v97_v7 }
 0x18f   :  { %v120_v38 = vmul.f32 %v322_v35, %v111_v34 }
 0x190   :  { %v380_v36 = vpop.eup %379 }
 0x191   :  { %v112_v37 = vmul.f32 %v380_v36, %v98_v11  ;;  %v129_v41 = vadd.f32 %v323_v39, %v120_v38 }
 0x193   :  { %v121_v40 = vmul.f32 %v322_v35, %v112_v37 }
 0x195   :  { %v130_v42 = vadd.f32 %v323_v39, %v121_v40 }
 0x197   :  { %v131_v43 = vpack.c.bf16 %v130_v42, %v129_v41 }
 0x199   :  { %275 = vmatmul.mubr.bf16.vlgmr.msra.gmra.mrb[0].mxu0 %v131_v43 }
 0x26c   :  { %v276_v51 = vpop.f32.mrb[0].mxu0 }
 0x26d   :  { %v277_v52 = vadd.f32 %v276_v51, %v155_v49  ;;  %v278_v53 = vpop.f32.mrb[1].mxu0 }
 0x26e   :  { %v279_v54 = vadd.f32 %v278_v53, %v159_v50  ;;  %v280_v55 = vpop.f32.mrb[2].mxu0 }
 0x26f   :  { %v285_v56 = vmax.f32 %v277_v52, 0.0  ;;  %v281_v57 = vadd.f32 %v280_v55, %v155_v49  ;;  %v282_v58 = vpop.f32.mrb[3].mxu0 }
 0x270   :  { %v286_v59 = vmax.f32 %v279_v54, 0.0  ;;  %v283_v60 = vadd.f32 %v282_v58, %v159_v50 }
 0x271   :  { %v287_v61 = vmax.f32 %v281_v57, 0.0 }
 0x272   :  { %v342_v62 = vpack.c.bf16 %v286_v59, %v285_v56  ;;  %v288_v63 = vmax.f32 %v283_v60, 0.0 }
 0x274   :  { %301 = vst [vmem:[#allocation12] sm:$0xff] %v342_v62  ;;  %v343_v0 = vpack.c.bf16 %v288_v63, %v287_v61 }
 0x276   :  { %302 = vst [vmem:[#allocation12 + $0x8] sm:$0xff] %v343_v0 }
 0x277   :  { %502 = shalt.err (!%p499_p2)
}
 0x278   :  { %s503_s7 = scalar_lea.hbm %s646_s5, 256 }
 0x279   :  { %p504_p3 = scmp.ne.s32.totalorder %s646_s5, %s503_s7  ;;  %p507_p4 = scmp.lt.u32.totalorder %s503_s7, %s646_s5 }
 0x27b   :  { %p509_p5 = pnand %p507_p4, %p504_p3 }
 0x27d   :  { %512 = shalt.err (!%p509_p5)
}
 0x27e   :  { %314 = dma.vmem_to_hbm [thread:$0]  %s309_s3, 256, %s646_s5, [#allocation5], %s524_s17, %s524_s17, %s525_s18  }
 0x27f   :  { %519 = dma.done.wait [#allocation5], 256  }
 0x280   :  { %520 = vsyncadd [#allocation5], 4294967040 }
 0x281   :  { %318 = vsyncpa [#allocation4], 1 }
 0x282   :  { %319 = vsyncpa [#allocation7], 1 }
 0x283   :  { %320 = vsyncpa [#allocation10], 1 }
 0x284   :  { %321 = vsyncpa [#allocation5], 1 }

// kernel: transformer_encoder.21
= control target key start
LH: loop header
LB: loop body
LE: loop exit
PB: predicated region body
PF: predicated region fallthrough
CT: control target
= control target key end

     0   :  { %8 = vsyncpa [#allocation3], 0  ;;  %s308_s0 = inlined_call_operand.hbm [shape: f32[16,128], index: 0, kind: input, shape index: {}]   ;;  %s309_s1 = inlined_call_operand.hbm [shape: f32[1,128], index: 1, kind: input, shape index: {}]   ;;  %s310_s2 = inlined_call_operand.hbm [shape: f32[1,128], index: 2, kind: input, shape index: {}]   ;;  %s311_s3 = inlined_call_operand.hbm [shape: f32[16,128], index: 3, kind: output, shape index: {}]  }
   0x1   :  { %9 = vsyncpa [#allocation6], 0 }
   0x2   :  { %10 = vsyncpa [#allocation4], 0  ;;  %s221_s12 = smov [#allocation5]   ;;  %s222_s14 = smov [#allocation2]  }
   0x3   :  { %s29_s13 = sshll.u32 %s221_s12, 4  ;;  %s16_s15 = sshll.u32 %s222_s14, 4  ;;  %s30_s13 = int_to_ptr.vmem [resolvable:$true] %s29_s13  ;;  %s247_s15 = int_to_ptr.vmem [resolvable:$true] %s16_s15 }
   0x4   :  { %s127_s18 = scalar_lea.hbm %s309_s1, 16 }
   0x5   :  { %p128_p0 = scmp.ne.s32.totalorder %s309_s1, %s127_s18  ;;  %p131_p1 = scmp.lt.u32.totalorder %s127_s18, %s309_s1 }
   0x7   :  { %p133_p2 = pnand %p131_p1, %p128_p0 }
   0x9   :  { %136 = shalt.err (!%p133_p2)
}
   0xa   :  { %s137_s23 = scalar_lea.vmem %s30_s13, 16  ;;  %s141_s24 = scalar_lea.vmem %s30_s13, 32 }
   0xb   :  { %p138_p3 = scmp.ne.s32.totalorder %s30_s13, %s137_s23  ;;  %p142_p4 = scmp.lt.s32.totalorder %s30_s13, %s30_s13 }
   0xc   :  { %p143_p5 = scmp.lt.s32.totalorder %s141_s24, %s137_s23 }
   0xe   :  { %p144_p6 = por %p143_p5, %p142_p4 }
  0x10   :  { %p145_p7 = pnand %p144_p6, %p138_p3 }
  0x12   :  { %148 = shalt.err (!%p145_p7)
}
  0x13   :  { %32 = dma.hbm_to_vmem [thread:$0]  %s309_s1, 16, %s30_s13, [#allocation6]  }
  0x14   :  { %s149_s29 = scalar_lea.hbm %s308_s0, 256 }
  0x15   :  { %p150_p8 = scmp.ne.s32.totalorder %s308_s0, %s149_s29  ;;  %p153_p9 = scmp.lt.u32.totalorder %s149_s29, %s308_s0 }
  0x17   :  { %p155_p10 = pnand %p153_p9, %p150_p8 }
  0x19   :  { %158 = shalt.err (!%p155_p10)
}
  0x1a   :  { %s159_s7 = scalar_lea.vmem %s247_s15, 256  ;;  %p164_p12 = scmp.lt.s32.totalorder %s247_s15, %s247_s15 }
  0x1b   :  { %p160_p11 = scmp.ne.s32.totalorder %s247_s15, %s159_s7  ;;  %p165_p13 = scmp.lt.s32.totalorder %s159_s7, %s159_s7 }
  0x1d   :  { %p166_p0 = por %p165_p13, %p164_p12 }
  0x1f   :  { %p167_p1 = pnand %p166_p0, %p160_p11 }
  0x21   :  { %170 = shalt.err (!%p167_p1)
}
  0x22   :  { %s223_s1 = smov 128   ;;  %s224_s8 = smov 8  }
  0x23   :  { %22 = dma.hbm_to_vmem [thread:$0]  %s308_s0, 256, %s247_s15, [#allocation3], %s223_s1, %s223_s1, %s224_s8  }
  0x24   :  { %s225_s11 = smov [#allocation7]   ;;  %s171_s16 = scalar_lea.hbm %s310_s2, 16 }
  0x25   :  { %s39_s12 = sshll.u32 %s225_s11, 4  ;;  %p172_p2 = scmp.ne.s32.totalorder %s310_s2, %s171_s16  ;;  %s40_s12 = int_to_ptr.vmem [resolvable:$true] %s39_s12 }
  0x26   :  { %p175_p3 = scmp.lt.u32.totalorder %s171_s16, %s310_s2 }
  0x28   :  { %p177_p4 = pnand %p175_p3, %p172_p2 }
  0x2a   :  { %180 = shalt.err (!%p177_p4)
}
  0x2b   :  { %s181_s21 = scalar_lea.vmem %s40_s12, 16  ;;  %s185_s0 = scalar_lea.vmem %s40_s12, 32 }
  0x2c   :  { %p182_p5 = scmp.ne.s32.totalorder %s40_s12, %s181_s21  ;;  %p186_p6 = scmp.lt.s32.totalorder %s40_s12, %s40_s12 }
  0x2d   :  { %p187_p7 = scmp.lt.s32.totalorder %s185_s0, %s181_s21 }
  0x2f   :  { %p188_p8 = por %p187_p7, %p186_p6 }
  0x31   :  { %p189_p9 = pnand %p188_p8, %p182_p5 }
  0x33   :  { %192 = shalt.err (!%p189_p9)
}
  0x34   :  { %42 = dma.hbm_to_vmem [thread:$0]  %s310_s2, 16, %s40_s12, [#allocation6]  }
  0x35   :  { %215 = dma.done.wait [#allocation3], 256  }
  0x36   :  { %216 = vsyncadd [#allocation3], 4294967040 }
  0x37   :  { %217 = dma.done.wait [#allocation6], 32  }
  0x38   :  { %218 = vsyncadd [#allocation6], 4294967264  ;;  %v52_v0 = vld [vmem:[#allocation2] sm:$0xff]  ;;  %v53_v1 = vld [vmem:[#allocation2 + $0x8] sm:$0xff]  ;;  %s226_s2 = smov [#allocation8]  }
  0x39   :  { %54 = vadd.xlane.f32.xlu0 %v52_v0  ;;  %v115_v17 = vld [vmem:[#allocation5] ss:$0 sm:$0xff]  ;;  %v116_v19 = vld [vmem:[#allocation7] ss:$0 sm:$0xff]  ;;  %s102_s23 = sshll.u32 %s226_s2, 4  ;;  %s103_s23 = int_to_ptr.vmem [resolvable:$true] %s102_s23 }
  0x3a   :  { %s193_s24 = scalar_lea.vmem %s103_s23, 256  ;;  %p198_p11 = scmp.lt.s32.totalorder %s103_s23, %s103_s23 }
  0x3b   :  { %p194_p10 = scmp.ne.s32.totalorder %s103_s23, %s193_s24  ;;  %p199_p12 = scmp.lt.s32.totalorder %s193_s24, %s193_s24 }
  0x3d   :  { %56 = vadd.xlane.f32.xlu0 %v53_v1  ;;  %p200_p13 = por %p199_p12, %p198_p11 }
  0x3f   :  { %p201_p0 = pnand %p200_p13, %p194_p10 }
  0xc6   :  { %v55_v2 = vpop.xlane.xlu0 %54 }
  0xc7   :  { %v59_v3 = vmul.f32 0.0078125, %v55_v2 }
  0xc9   :  { %v61_v4 = vsub.f32 %v52_v0, %v59_v3 }
  0xca   :  { %v57_v5 = vpop.xlane.xlu0 %56 }
  0xcb   :  { %v60_v6 = vmul.f32 0.0078125, %v57_v5  ;;  %v63_v7 = vmul.f32 %v61_v4, %v61_v4 }
  0xcd   :  { %v62_v8 = vsub.f32 %v53_v1, %v60_v6  ;;  %65 = vadd.xlane.f32.xlu1 %v63_v7 }
  0xcf   :  { %v64_v9 = vmul.f32 %v62_v8, %v62_v8 }
  0xd1   :  { %67 = vadd.xlane.f32.xlu1 %v64_v9 }
 0x15a   :  { %v66_v10 = vpop.xlane.xlu1 %65 }
 0x15b   :  { %v69_v11 = vmul.f32 0.0078125, %v66_v10 }
 0x15d   :  { %v71_v12 = vadd.f32 1e-05, %v69_v11 }
 0x15e   :  { %v68_v13 = vpop.xlane.xlu1 %67 }
 0x15f   :  { %123 = vrsqrt.f32 %v71_v12  ;;  %v70_v14 = vmul.f32 0.0078125, %v68_v13 }
 0x161   :  { %v72_v15 = vadd.f32 1e-05, %v70_v14 }
 0x163   :  { %125 = vrsqrt.f32 %v72_v15 }
 0x169   :  { %v124_v16 = vpop.eup %123 }
 0x16a   :  { %v75_v18 = vmul.f32 %v124_v16, %v61_v4 }
 0x16c   :  { %v84_v20 = vmul.f32 %v115_v17, %v75_v18 }
 0x16d   :  { %v126_v21 = vpop.eup %125 }
 0x16e   :  { %v76_v22 = vmul.f32 %v126_v21, %v62_v8  ;;  %v93_v23 = vadd.f32 %v116_v19, %v84_v20 }
 0x170   :  { %v85_v24 = vmul.f32 %v115_v17, %v76_v22  ;;  %95 = vst [vmem:[#allocation8] sm:$0xff] %v93_v23 }
 0x172   :  { %v94_v25 = vadd.f32 %v116_v19, %v85_v24 }
 0x174   :  { %96 = vst [vmem:[#allocation8 + $0x8] sm:$0xff] %v94_v25 }
 0x175   :  { %204 = shalt.err (!%p201_p0)
}
 0x176   :  { %s205_s27 = scalar_lea.hbm %s311_s3, 256 }
 0x177   :  { %p206_p1 = scmp.ne.s32.totalorder %s311_s3, %s205_s27  ;;  %p209_p2 = scmp.lt.u32.totalorder %s205_s27, %s311_s3 }
 0x179   :  { %p211_p3 = pnand %p209_p2, %p206_p1 }
 0x17b   :  { %214 = shalt.err (!%p211_p3)
}
 0x17c   :  { %108 = dma.vmem_to_hbm [thread:$0]  %s103_s23, 256, %s311_s3, [#allocation4], %s223_s1, %s223_s1, %s224_s8  }
 0x17d   :  { %219 = dma.done.wait [#allocation4], 256  }
 0x17e   :  { %220 = vsyncadd [#allocation4], 4294967040 }
 0x17f   :  { %112 = vsyncpa [#allocation3], 1 }
 0x180   :  { %113 = vsyncpa [#allocation6], 1 }
 0x181   :  { %114 = vsyncpa [#allocation4], 1 }

// kernel: transformer_encoder.15
= control target key start
LH: loop header
LB: loop body
LE: loop exit
PB: predicated region body
PF: predicated region fallthrough
CT: control target
= control target key end

     0   :  { %9 = vsyncpa [#allocation4], 0  ;;  %s601_s0 = inlined_call_operand.hbm [shape: bf16[16,256], index: 0, kind: input, shape index: {}]   ;;  %s602_s1 = inlined_call_operand.hbm [shape: bf16[256,128], index: 1, kind: input, shape index: {}]   ;;  %s603_s2 = inlined_call_operand.hbm [shape: f32[1,128], index: 2, kind: input, shape index: {}]   ;;  %s604_s3 = inlined_call_operand.hbm [shape: f32[16,128], index: 3, kind: input, shape index: {}]   ;;  %s605_s4 = inlined_call_operand.hbm [shape: f32[16,128], index: 4, kind: output, shape index: {}]  }
   0x1   :  { %10 = vsyncpa [#allocation7], 0 }
   0x2   :  { %11 = vsyncpa [#allocation10], 0 }
   0x3   :  { %12 = vsyncpa [#allocation5], 0  ;;  %s491_s15 = smov [#allocation6]   ;;  %s373_s19 = scalar_lea.hbm %s602_s1, 2048 }
   0x4   :  { %s30_s16 = sshll.u32 %s491_s15, 4  ;;  %p374_p0 = scmp.ne.s32.totalorder %s602_s1, %s373_s19  ;;  %s31_s16 = int_to_ptr.vmem [resolvable:$true] %s30_s16 }
   0x5   :  { %p377_p1 = scmp.lt.u32.totalorder %s373_s19, %s602_s1 }
   0x7   :  { %p379_p2 = pnand %p377_p1, %p374_p0 }
   0x9   :  { %382 = shalt.err (!%p379_p2)
}
   0xa   :  { %s383_s24 = scalar_lea.vmem %s31_s16, 2048  ;;  %p388_p4 = scmp.lt.s32.totalorder %s31_s16, %s31_s16 }
   0xb   :  { %p384_p3 = scmp.ne.s32.totalorder %s31_s16, %s383_s24  ;;  %p389_p5 = scmp.lt.s32.totalorder %s383_s24, %s383_s24 }
   0xd   :  { %p390_p6 = por %p389_p5, %p388_p4 }
   0xf   :  { %p391_p7 = pnand %p390_p6, %p384_p3 }
  0x11   :  { %394 = shalt.err (!%p391_p7)
}
  0x12   :  { %s492_s25 = smov 64   ;;  %s493_s26 = smov 4  }
  0x13   :  { %36 = dma.hbm_to_vmem [thread:$0]  %s602_s1, 2048, %s31_s16, [#allocation7], %s492_s25, %s492_s25, %s493_s26  }
  0x14   :  { %s494_s29 = smov [#allocation3]   ;;  %s395_s7 = scalar_lea.hbm %s601_s0, 256 }
  0x15   :  { %s18_s30 = sshll.u32 %s494_s29, 4  ;;  %p396_p8 = scmp.ne.s32.totalorder %s601_s0, %s395_s7  ;;  %s19_s30 = int_to_ptr.vmem [resolvable:$true] %s18_s30 }
  0x16   :  { %p399_p9 = scmp.lt.u32.totalorder %s395_s7, %s601_s0 }
  0x18   :  { %p401_p10 = pnand %p399_p9, %p396_p8 }
  0x1a   :  { %404 = shalt.err (!%p401_p10)
}
  0x1b   :  { %s405_s12 = scalar_lea.vmem %s19_s30, 256  ;;  %p410_p12 = scmp.lt.s32.totalorder %s19_s30, %s19_s30 }
  0x1c   :  { %p406_p11 = scmp.ne.s32.totalorder %s19_s30, %s405_s12  ;;  %p411_p13 = scmp.lt.s32.totalorder %s405_s12, %s405_s12 }
  0x1e   :  { %p412_p0 = por %p411_p13, %p410_p12 }
  0x20   :  { %p413_p1 = pnand %p412_p0, %p406_p11 }
  0x22   :  { %416 = shalt.err (!%p413_p1)
}
  0x23   :  { %s495_s1 = smov 128   ;;  %s496_s13 = smov 8  }
  0x24   :  { %24 = dma.hbm_to_vmem [thread:$0]  %s601_s0, 256, %s19_s30, [#allocation4], %s495_s1, %s495_s1, %s496_s13  }
  0x25   :  { %s497_s16 = smov [#allocation8]   ;;  %s498_s18 = smov [#allocation9]  }
  0x26   :  { %s43_s17 = sshll.u32 %s497_s16, 4  ;;  %s52_s19 = sshll.u32 %s498_s18, 4  ;;  %s44_s17 = int_to_ptr.vmem [resolvable:$true] %s43_s17  ;;  %s552_s19 = int_to_ptr.vmem [resolvable:$true] %s52_s19 }
  0x27   :  { %s417_s22 = scalar_lea.hbm %s603_s2, 16 }
  0x28   :  { %p418_p2 = scmp.ne.s32.totalorder %s603_s2, %s417_s22  ;;  %p421_p3 = scmp.lt.u32.totalorder %s417_s22, %s603_s2 }
  0x2a   :  { %p423_p4 = pnand %p421_p3, %p418_p2 }
  0x2c   :  { %426 = shalt.err (!%p423_p4)
}
  0x2d   :  { %s427_s0 = scalar_lea.vmem %s44_s17, 16  ;;  %s431_s27 = scalar_lea.vmem %s44_s17, 32 }
  0x2e   :  { %p428_p5 = scmp.ne.s32.totalorder %s44_s17, %s427_s0  ;;  %p432_p6 = scmp.lt.s32.totalorder %s44_s17, %s44_s17 }
  0x2f   :  { %p433_p7 = scmp.lt.s32.totalorder %s431_s27, %s427_s0 }
  0x31   :  { %p434_p8 = por %p433_p7, %p432_p6 }
  0x33   :  { %p435_p9 = pnand %p434_p8, %p428_p5 }
  0x35   :  { %438 = shalt.err (!%p435_p9)
}
  0x36   :  { %46 = dma.hbm_to_vmem [thread:$0]  %s603_s2, 16, %s44_s17, [#allocation7]  }
  0x37   :  { %s439_s6 = scalar_lea.hbm %s604_s3, 256 }
  0x38   :  { %p440_p10 = scmp.ne.s32.totalorder %s604_s3, %s439_s6  ;;  %p443_p11 = scmp.lt.u32.totalorder %s439_s6, %s604_s3 }
  0x3a   :  { %p445_p12 = pnand %p443_p11, %p440_p10 }
  0x3c   :  { %448 = shalt.err (!%p445_p12)
}
  0x3d   :  { %s449_s11 = scalar_lea.vmem %s552_s19, 256  ;;  %p454_p0 = scmp.lt.s32.totalorder %s552_s19, %s552_s19 }
  0x3e   :  { %p450_p13 = scmp.ne.s32.totalorder %s552_s19, %s449_s11  ;;  %p455_p1 = scmp.lt.s32.totalorder %s449_s11, %s449_s11 }
  0x40   :  { %p456_p2 = por %p455_p1, %p454_p0 }
  0x42   :  { %p457_p3 = pnand %p456_p2, %p450_p13 }
  0x44   :  { %460 = shalt.err (!%p457_p3)
}
  0x45   :  { %58 = dma.hbm_to_vmem [thread:$0]  %s604_s3, 256, %s552_s19, [#allocation10], %s495_s1, %s495_s1, %s496_s13  }
  0x46   :  { %483 = dma.done.wait [#allocation4], 256  }
  0x47   :  { %484 = vsyncadd [#allocation4], 4294967040 }
  0x48   :  { %485 = dma.done.wait [#allocation7], 2064  }
  0x49   :  { %486 = vsyncadd [#allocation7], 4294965232 }
  0x4a   :  { %487 = dma.done.wait [#allocation10], 256  }
  0x4b   :  { %488 = vsyncadd [#allocation10], 4294967040  ;;  %v354_v0 = vld [vmem:[#allocation6 + $0x40] sm:$0xff]   ;;  %v356_v2 = vld [vmem:[#allocation6 + $0x48] sm:$0xff]   ;;  %s499_s3 = smov [#allocation11]  }
  0x4c   :  { %v355_v1 = vld [vmem:[#allocation6] sm:$0xff]   ;;  %323 = vmatprep.subr.bf16.mxu0 %v354_v0  ;;  %v357_v3 = vld [vmem:[#allocation6 + $0x8] sm:$0xff]   ;;  %v358_v4 = vld [vmem:[#allocation6 + $0x50] sm:$0xff]   ;;  %s290_s14 = sshll.u32 %s499_s3, 4  ;;  %s291_s14 = int_to_ptr.vmem [resolvable:$true] %s290_s14 }
  0x4d   :  { %324 = vmatpush3.bf16.msra.mxu0 %v355_v1  ;;  %v359_v5 = vld [vmem:[#allocation6 + $0x10] sm:$0xff]   ;;  %v360_v6 = vld [vmem:[#allocation6 + $0x58] sm:$0xff]   ;;  %v362_v8 = vld [vmem:[#allocation6 + $0x60] sm:$0xff]   ;;  %s461_s15 = scalar_lea.vmem %s291_s14, 256  ;;  %p466_p5 = scmp.lt.s32.totalorder %s291_s14, %s291_s14 }
  0x4e   :  { %325 = vmatprep.subr.bf16.mxu0 %v356_v2  ;;  %v361_v7 = vld [vmem:[#allocation6 + $0x18] sm:$0xff]   ;;  %v363_v9 = vld [vmem:[#allocation6 + $0x20] sm:$0xff]   ;;  %v364_v10 = vld [vmem:[#allocation6 + $0x68] sm:$0xff]   ;;  %p462_p4 = scmp.ne.s32.totalorder %s291_s14, %s461_s15  ;;  %p467_p6 = scmp.lt.s32.totalorder %s461_s15, %s461_s15 }
  0x4f   :  { %v372_v11 = vld [vmem:[#allocation3 + $0x4] ss:$8 sps:$4 sm:$0xff]   ;;  %v365_v12 = vld [vmem:[#allocation6 + $0x28] sm:$0xff]   ;;  %v370_v17 = vld [vmem:[#allocation3] ss:$8 sps:$4 sm:$0xff]  }
  0x50   :  { %252 = vmatprep.mubr.bf16.mxu0 %v372_v11  ;;  %v366_v13 = vld [vmem:[#allocation6 + $0x70] sm:$0xff]   ;;  %v368_v15 = vld [vmem:[#allocation6 + $0x78] sm:$0xff]   ;;  %v322_v20 = vld [vmem:[#allocation8] ss:$0 sm:$0xff]  ;;  %p468_p7 = por %p467_p6, %p466_p5 }
  0x51   :  { %326 = vmatpush3.bf16.msra.mxu0 %v357_v3  ;;  %v367_v14 = vld [vmem:[#allocation6 + $0x30] sm:$0xff]   ;;  %v369_v16 = vld [vmem:[#allocation6 + $0x38] sm:$0xff]   ;;  %v279_v23 = vld [vmem:[#allocation9] sm:$0xff] }
  0x52   :  { %327 = vmatprep.subr.bf16.mxu0 %v358_v4  ;;  %v280_v27 = vld [vmem:[#allocation9 + $0x8] sm:$0xff]  ;;  %p469_p8 = pnand %p468_p7, %p462_p4 }
  0x55   :  { %328 = vmatpush3.bf16.msra.mxu0 %v359_v5 }
  0x56   :  { %329 = vmatprep.subr.bf16.mxu0 %v360_v6 }
  0x59   :  { %330 = vmatpush3.bf16.msra.mxu0 %v361_v7 }
  0x5a   :  { %331 = vmatprep.subr.bf16.mxu0 %v362_v8 }
  0x5d   :  { %332 = vmatpush3.bf16.msra.mxu0 %v363_v9 }
  0x5e   :  { %333 = vmatprep.subr.bf16.mxu0 %v364_v10 }
  0x61   :  { %334 = vmatpush3.bf16.msra.mxu0 %v365_v12 }
  0x62   :  { %335 = vmatprep.subr.bf16.mxu0 %v366_v13 }
  0x65   :  { %336 = vmatpush3.bf16.msra.mxu0 %v367_v14 }
  0x66   :  { %337 = vmatprep.subr.bf16.mxu0 %v368_v15 }
  0x69   :  { %338 = vmatpush3.bf16.msra.mxu0 %v369_v16 }
  0x6c   :  { %253 = vmatmul.mubr.bf16.vlgmr.msra.gmra.mrb[0].mxu0 %v370_v17 }
 0x13f   :  { %v339_v18 = vpop.f32.mrb[0].mxu0 }
 0x140   :  { %v340_v19 = vpop.f32.mrb[1].mxu0 }
 0x141   :  { %v341_v21 = vadd.f32 %v340_v19, %v339_v18  ;;  %v342_v22 = vpop.f32.mrb[2].mxu0 }
 0x142   :  { %v343_v24 = vpop.f32.mrb[3].mxu0 }
 0x143   :  { %v277_v25 = vadd.f32 %v341_v21, %v322_v20  ;;  %v344_v26 = vadd.f32 %v343_v24, %v342_v22 }
 0x145   :  { %v281_v28 = vadd.f32 %v279_v23, %v277_v25  ;;  %v278_v29 = vadd.f32 %v344_v26, %v322_v20 }
 0x147   :  { %283 = vst [vmem:[#allocation11] sm:$0xff] %v281_v28  ;;  %v282_v30 = vadd.f32 %v280_v27, %v278_v29 }
 0x149   :  { %284 = vst [vmem:[#allocation11 + $0x8] sm:$0xff] %v282_v30 }
 0x14a   :  { %472 = shalt.err (!%p469_p8)
}
 0x14b   :  { %s473_s18 = scalar_lea.hbm %s605_s4, 256 }
 0x14c   :  { %p474_p9 = scmp.ne.s32.totalorder %s605_s4, %s473_s18  ;;  %p477_p10 = scmp.lt.u32.totalorder %s473_s18, %s605_s4 }
 0x14e   :  { %p479_p11 = pnand %p477_p10, %p474_p9 }
 0x150   :  { %482 = shalt.err (!%p479_p11)
}
 0x151   :  { %296 = dma.vmem_to_hbm [thread:$0]  %s291_s14, 256, %s605_s4, [#allocation5], %s495_s1, %s495_s1, %s496_s13  }
 0x152   :  { %489 = dma.done.wait [#allocation5], 256  }
 0x153   :  { %490 = vsyncadd [#allocation5], 4294967040 }
 0x154   :  { %300 = vsyncpa [#allocation4], 1 }
 0x155   :  { %301 = vsyncpa [#allocation7], 1 }
 0x156   :  { %302 = vsyncpa [#allocation10], 1 }
 0x157   :  { %303 = vsyncpa [#allocation5], 1 }

</bundles_post_ra>
